<compile_context>
chip_gen: v7x
topology: tpu7x:2x2x1
jax: 0.10.0
libtpu: 0.0.40
codegen_flags: <defaults>
</compile_context>

<pallas_src>
import functools

import jax
import jax.numpy as jnp
import numpy as np
from jax.experimental import pallas as pl
from jax.experimental.pallas import tpu as pltpu


def _conv_bn_lrelu_kernel(x_ref, w_ref, s_ref, b_ref, o_ref, *,
                          kh, kw, stride, th, w_out):
    """One grid step: one image (axis 0) x one band of `th` output rows."""
    j = pl.program_id(1)
    band_h = (th - 1) * stride + kh            # input rows needed for the band
    row0 = j * (th * stride)
    if (th * stride) % 8 == 0:
        row0 = pl.multiple_of(row0, 8)
    # (band_h, Wp, C_in) bf16 slab of the VMEM-resident padded image.
    band = x_ref[0, pl.ds(row0, band_h), :, :]

    # Pack the kh*kw shifted patches along the contraction axis:
    # LHS columns [idx*C_in, (idx+1)*C_in) <-> tap idx = ih*kw + iw.
    cols = []
    for idx in range(kh * kw):
        ih, iw = idx // kw, idx % kw
        patch = band[ih:ih + (th - 1) * stride + 1:stride,
                     iw:iw + (w_out - 1) * stride + 1:stride, :]
        # (th, w_out, C_in) -> (th*w_out, C_in); w_out is a multiple of 8 in
        # the chosen tilings so this is a cheap sublane re-indexing.
        cols.append(patch.reshape(th * w_out, patch.shape[-1]))
    lhs = jnp.concatenate(cols, axis=-1) if len(cols) > 1 else cols[0]  # (mt, K)

    # Single K-folded matmul, output already channel-major: (C8, mt) f32.
    out_t = jax.lax.dot_general(
        w_ref[...], lhs,
        dimension_numbers=(((1,), (1,)), ((), ())),
        preferred_element_type=jnp.float32)

    y = out_t * s_ref[...] + b_ref[...]        # BatchNorm (inference), f32
    y = jnp.maximum(y, 0.1 * y)                # LeakyReLU(0.1)
    o_ref[0] = y.astype(o_ref.dtype)           # one dense (C8, mt) store


def _pick_row_tile(h_out, w_out, hp, wp, c_in, c8, k, stride, kh,
                   budget_bytes=12 * 1024 * 1024):
    """Largest whole-row band that is lane aligned and fits the VMEM budget."""
    divisors = [t for t in range(1, h_out + 1) if h_out % t == 0]
    # Valid bands: flattened spatial extent is a multiple of 128 lanes, or the
    # band covers the whole output (full-extent block is always legal).
    valid = [t for t in divisors if (t * w_out) % 128 == 0 or t == h_out]

    def est(t):
        mt = t * w_out
        band_h = (t - 1) * stride + kh
        b = 2 * hp * wp * c_in * 2             # double-buffered padded image
        b += 2 * c8 * k * 2 + 4 * c8 * 4       # weights + scale + bias
        b += 2 * mt * c8 * 4                   # double-buffered output block
        b += mt * k * 2 + mt * c8 * 4          # LHS slab + f32 result
        b += band_h * wp * c_in * 2            # band value
        return b

    fitting = [t for t in valid if est(t) <= budget_bytes]
    th = max(fitting) if fitting else min(valid)
    return th, est(th)


def conv2d_bn_leakyrelu(x_nchw, weight_oihw, gamma, beta, running_mean,
                        running_var, *, stride, padding, eps=1e-5):
    """Fused Conv2d(bias=False) + BN(eval) + LeakyReLU(0.1) via Pallas."""
    N, C_in, H, W = x_nchw.shape
    C_out, C_in_w, kh, kw = weight_oihw.shape
    assert C_in == C_in_w
    H_out = (H + 2 * padding - kh) // stride + 1
    W_out = (W + 2 * padding - kw) // stride + 1
    K = kh * kw * C_in
    C8 = ((C_out + 7) // 8) * 8                # sublane-pad channels (not 128)

    # ---- glue: NCHW -> NHWC, zero-pad spatial, cast matmul inputs to bf16 ----
    x = jnp.transpose(x_nchw, (0, 2, 3, 1))
    xp = jnp.pad(x, ((0, 0), (padding, padding), (padding, padding), (0, 0)))
    xp = xp.astype(jnp.bfloat16)
    Hp, Wp = int(xp.shape[1]), int(xp.shape[2])

    # ---- weights: OIHW -> (C_out, kh, kw, C_in) -> (C8, K) bf16 ----
    w_t = jnp.transpose(weight_oihw, (0, 2, 3, 1)).reshape(C_out, K)
    w_t = jnp.pad(w_t, ((0, C8 - C_out), (0, 0))).astype(jnp.bfloat16)

    # ---- BN (inference running stats), applied post-matmul in f32 ----
    scale = (gamma / jnp.sqrt(running_var + eps)).astype(jnp.float32)
    bias = beta.astype(jnp.float32) - running_mean.astype(jnp.float32) * scale
    scale_c = jnp.pad(scale, (0, C8 - C_out)).reshape(C8, 1)
    bias_c = jnp.pad(bias, (0, C8 - C_out)).reshape(C8, 1)

    # ---- tiling: lane-aligned whole-row bands within a VMEM budget ----
    th, est_bytes = _pick_row_tile(H_out, W_out, Hp, Wp, C_in, C8, K, stride, kh)
    nh = H_out // th
    mt = th * W_out

    kernel = functools.partial(_conv_bn_lrelu_kernel, kh=kh, kw=kw,
                               stride=stride, th=th, w_out=W_out)

    flops = 2 * N * H_out * W_out * K * C_out
    bytes_accessed = (N * Hp * Wp * C_in * 2 + C8 * K * 2 + 2 * C8 * 4
                      + N * C8 * H_out * W_out * 4)

    vmem_limit = None
    if est_bytes > 10 * 1024 * 1024:           # only raise when actually needed
        vmem_limit = int(min(max(2 * est_bytes, 32 * 1024 * 1024),
                             48 * 1024 * 1024))

    out = pl.pallas_call(
        kernel,
        out_shape=jax.ShapeDtypeStruct((N, C8, H_out * W_out), jnp.float32),
        grid_spec=pltpu.PrefetchScalarGridSpec(
            num_scalar_prefetch=0,
            grid=(N, nh),
            in_specs=[
                # Whole padded image; block index constant across the band
                # axis so it is DMA'd once per image.
                pl.BlockSpec((1, Hp, Wp, C_in), lambda n, j: (n, 0, 0, 0)),
                pl.BlockSpec((C8, K), lambda n, j: (0, 0)),
                pl.BlockSpec((C8, 1), lambda n, j: (0, 0)),
                pl.BlockSpec((C8, 1), lambda n, j: (0, 0)),
            ],
            # Channel-major, lane-dense output: (C8 sublanes, mt lanes).
            out_specs=pl.BlockSpec((1, C8, mt), lambda n, j: (n, 0, j)),
        ),
        compiler_params=pltpu.CompilerParams(
            dimension_semantics=("parallel", "parallel"),
            vmem_limit_bytes=vmem_limit),
        cost_estimate=pl.CostEstimate(flops=flops, transcendentals=0,
                                      bytes_accessed=bytes_accessed),
    )(xp, w_t, scale_c, bias_c)

    # (N, C8, H_out*W_out) is already channel-major: free reshape + slice,
    # no transpose pass over the output.
    return out.reshape(N, C8, H_out, W_out)[:, :C_out]


def _reference(x_nchw, weight_oihw, gamma, beta, mean, var, *, stride,
               padding, eps=1e-5):
    y = jax.lax.conv_general_dilated(
        x_nchw, weight_oihw,
        window_strides=(stride, stride),
        padding=((padding, padding), (padding, padding)),
        dimension_numbers=("NCHW", "OIHW", "NCHW"))
    scale = (gamma / jnp.sqrt(var + eps)).reshape(1, -1, 1, 1)
    bias = (beta - mean * gamma / jnp.sqrt(var + eps)).reshape(1, -1, 1, 1)
    y = y * scale + bias
    return jnp.where(y >= 0.0, y, 0.1 * y)


if __name__ == "__main__":
    # Module config: conv2D_BN_LeakyRelu(inplanes=4, outplanes=8,
    #                                    kernelsize=3, stride=1, padding=1)
    inplanes, outplanes, ksize, stride, padding = 4, 8, 3, 1, 1
    N, H, W = 2, 16, 16

    key = jax.random.PRNGKey(0)
    kx, kw_, kg, kb, km, kv = jax.random.split(key, 6)

    x = jax.random.normal(kx, (N, inplanes, H, W), dtype=jnp.float32)
    weight = 0.1 * jax.random.normal(
        kw_, (outplanes, inplanes, ksize, ksize), dtype=jnp.float32)
    gamma = 1.0 + 0.1 * jax.random.normal(kg, (outplanes,), dtype=jnp.float32)
    beta = 0.1 * jax.random.normal(kb, (outplanes,), dtype=jnp.float32)
    running_mean = 0.1 * jax.random.normal(km, (outplanes,), dtype=jnp.float32)
    running_var = jnp.abs(jax.random.normal(kv, (outplanes,),
                                            dtype=jnp.float32)) + 0.5

    fn = jax.jit(functools.partial(conv2d_bn_leakyrelu,
                                   stride=stride, padding=padding))
    out = fn(x, weight, gamma, beta, running_mean, running_var)
    out = jax.block_until_ready(out)

    ref = _reference(x, weight, gamma, beta, running_mean, running_var,
                     stride=stride, padding=padding)
    # bf16 matmul inputs (f32 accumulation) -> slightly looser tolerance.
    np.testing.assert_allclose(np.asarray(out), np.asarray(ref),
                               rtol=2e-2, atol=2e-2)
    print("KERNEL_OK")
</pallas_src>

<mosaic_0001>
module attributes {stable_mosaic.version = 11 : i64} {
  func.func @_conv_bn_lrelu_kernel(%arg0: i32, %arg1: i32, %arg2: memref<1x18x18x4xbf16, #tpu.memory_space<vmem>>, %arg3: memref<8x36xbf16, #tpu.memory_space<vmem>>, %arg4: memref<8x1xf32, #tpu.memory_space<vmem>>, %arg5: memref<8x1xf32, #tpu.memory_space<vmem>>, %arg6: memref<1x8x256xf32, #tpu.memory_space<vmem>>) attributes {dimension_semantics = [#tpu.dimension_semantics<parallel>, #tpu.dimension_semantics<parallel>], iteration_bounds = array<i64: 2, 1>, scalar_prefetch = 0 : i64, scratch_operands = 0 : i64, tpu.core_type = #tpu.core_type<tc>, window_params = [{transform_indices = @transform_0, window_bounds = array<i64: 1, 18, 18, 4>}, {pipeline_mode = #tpu.pipeline_mode<synchronous>, transform_indices = @transform_1, window_bounds = array<i64: 8, 36>}, {pipeline_mode = #tpu.pipeline_mode<synchronous>, transform_indices = @transform_2, window_bounds = array<i64: 8, 1>}, {pipeline_mode = #tpu.pipeline_mode<synchronous>, transform_indices = @transform_3, window_bounds = array<i64: 8, 1>}, {transform_indices = @transform_4, window_bounds = array<i64: 1, 8, 256>}]} {
    %c16_i32 = arith.constant 16 : i32
    %0 = arith.muli %arg1, %c16_i32 : i32
    %1 = tpu.assume_multiple %0, 8 : i32
    %c0 = arith.constant 0 : index
    %2 = arith.index_cast %1 : i32 to index
    %c0_0 = arith.constant 0 : index
    %c0_1 = arith.constant 0 : index
    %3 = vector.load %arg2[%c0, %2, %c0_0, %c0_1] : memref<1x18x18x4xbf16, #tpu.memory_space<vmem>>, vector<1x18x18x4xbf16>
    %4 = vector.shape_cast %3 : vector<1x18x18x4xbf16> to vector<18x18x4xbf16>
    %5 = vector.extract_strided_slice %4 {offsets = [0, 0, 0], sizes = [16, 16, 4], strides = [1, 1, 1]} : vector<18x18x4xbf16> to vector<16x16x4xbf16>
    %6 = vector.shape_cast %5 : vector<16x16x4xbf16> to vector<256x4xbf16>
    %7 = vector.extract_strided_slice %4 {offsets = [0, 1, 0], sizes = [16, 16, 4], strides = [1, 1, 1]} : vector<18x18x4xbf16> to vector<16x16x4xbf16>
    %8 = vector.shape_cast %7 : vector<16x16x4xbf16> to vector<256x4xbf16>
    %9 = vector.extract_strided_slice %4 {offsets = [0, 2, 0], sizes = [16, 16, 4], strides = [1, 1, 1]} : vector<18x18x4xbf16> to vector<16x16x4xbf16>
    %10 = vector.shape_cast %9 : vector<16x16x4xbf16> to vector<256x4xbf16>
    %11 = vector.extract_strided_slice %4 {offsets = [1, 0, 0], sizes = [16, 16, 4], strides = [1, 1, 1]} : vector<18x18x4xbf16> to vector<16x16x4xbf16>
    %12 = vector.shape_cast %11 : vector<16x16x4xbf16> to vector<256x4xbf16>
    %13 = vector.extract_strided_slice %4 {offsets = [1, 1, 0], sizes = [16, 16, 4], strides = [1, 1, 1]} : vector<18x18x4xbf16> to vector<16x16x4xbf16>
    %14 = vector.shape_cast %13 : vector<16x16x4xbf16> to vector<256x4xbf16>
    %15 = vector.extract_strided_slice %4 {offsets = [1, 2, 0], sizes = [16, 16, 4], strides = [1, 1, 1]} : vector<18x18x4xbf16> to vector<16x16x4xbf16>
    %16 = vector.shape_cast %15 : vector<16x16x4xbf16> to vector<256x4xbf16>
    %17 = vector.extract_strided_slice %4 {offsets = [2, 0, 0], sizes = [16, 16, 4], strides = [1, 1, 1]} : vector<18x18x4xbf16> to vector<16x16x4xbf16>
    %18 = vector.shape_cast %17 : vector<16x16x4xbf16> to vector<256x4xbf16>
    %19 = vector.extract_strided_slice %4 {offsets = [2, 1, 0], sizes = [16, 16, 4], strides = [1, 1, 1]} : vector<18x18x4xbf16> to vector<16x16x4xbf16>
    %20 = vector.shape_cast %19 : vector<16x16x4xbf16> to vector<256x4xbf16>
    %21 = vector.extract_strided_slice %4 {offsets = [2, 2, 0], sizes = [16, 16, 4], strides = [1, 1, 1]} : vector<18x18x4xbf16> to vector<16x16x4xbf16>
    %22 = vector.shape_cast %21 : vector<16x16x4xbf16> to vector<256x4xbf16>
    %23 = tpu.concatenate %6, %8, %10, %12, %14, %16, %18, %20, %22 in 1 : vector<256x4xbf16>, vector<256x4xbf16>, vector<256x4xbf16>, vector<256x4xbf16>, vector<256x4xbf16>, vector<256x4xbf16>, vector<256x4xbf16>, vector<256x4xbf16>, vector<256x4xbf16> -> vector<256x36xbf16>
    %c0_2 = arith.constant 0 : index
    %c0_3 = arith.constant 0 : index
    %24 = vector.load %arg3[%c0_2, %c0_3] : memref<8x36xbf16, #tpu.memory_space<vmem>>, vector<8x36xbf16>
    %cst = arith.constant dense<0.000000e+00> : vector<8x256xf32>
    %25 = tpu.matmul %24, %23, %cst {dimension_numbers = #tpu.dot_dimension_numbers<[1], [1], [0], [0], [0, 0, 1, 0], [], []>} : vector<8x36xbf16>, vector<256x36xbf16>, vector<8x256xf32> -> vector<8x256xf32>
    %c0_4 = arith.constant 0 : index
    %c0_5 = arith.constant 0 : index
    %26 = vector.load %arg4[%c0_4, %c0_5] : memref<8x1xf32, #tpu.memory_space<vmem>>, vector<8x1xf32>
    %27 = vector.broadcast %26 : vector<8x1xf32> to vector<8x256xf32>
    %28 = arith.mulf %25, %27 : vector<8x256xf32>
    %c0_6 = arith.constant 0 : index
    %c0_7 = arith.constant 0 : index
    %29 = vector.load %arg5[%c0_6, %c0_7] : memref<8x1xf32, #tpu.memory_space<vmem>>, vector<8x1xf32>
    %30 = vector.broadcast %29 : vector<8x1xf32> to vector<8x256xf32>
    %31 = arith.addf %28, %30 : vector<8x256xf32>
    %cst_8 = arith.constant 1.000000e-01 : f32
    %32 = vector.broadcast %cst_8 : f32 to vector<8x256xf32>
    %33 = arith.mulf %32, %31 : vector<8x256xf32>
    %34 = arith.maximumf %31, %33 : vector<8x256xf32>
    %c0_9 = arith.constant 0 : index
    %c0_10 = arith.constant 0 : index
    %c0_11 = arith.constant 0 : index
    %35 = vector.load %arg6[%c0_9, %c0_10, %c0_11] : memref<1x8x256xf32, #tpu.memory_space<vmem>>, vector<1x8x256xf32>
    %36 = vector.shape_cast %35 : vector<1x8x256xf32> to vector<8x256xf32>
    %37 = vector.shape_cast %34 : vector<8x256xf32> to vector<1x8x256xf32>
    tpu.vector_store %arg6[%c0_9, %c0_10, %c0_11], %37 {strides = array<i32>} : memref<1x8x256xf32, #tpu.memory_space<vmem>>, vector<1x8x256xf32>,
    return
  }
  func.func @transform_0(%arg0: i32, %arg1: i32) -> (i32, i32, i32, i32) {
    %c0_i32 = arith.constant 0 : i32
    %c0_i32_0 = arith.constant 0 : i32
    %c0_i32_1 = arith.constant 0 : i32
    %c0_i32_2 = arith.constant 0 : i32
    return %arg0, %c0_i32, %c0_i32_0, %c0_i32_1 : i32, i32, i32, i32
  }
  func.func @transform_1(%arg0: i32, %arg1: i32) -> (i32, i32) {
    %c0_i32 = arith.constant 0 : i32
    %c0_i32_0 = arith.constant 0 : i32
    %c0_i32_1 = arith.constant 0 : i32
    return %c0_i32, %c0_i32_0 : i32, i32
  }
  func.func @transform_2(%arg0: i32, %arg1: i32) -> (i32, i32) {
    %c0_i32 = arith.constant 0 : i32
    %c0_i32_0 = arith.constant 0 : i32
    %c0_i32_1 = arith.constant 0 : i32
    return %c0_i32, %c0_i32_0 : i32, i32
  }
  func.func @transform_3(%arg0: i32, %arg1: i32) -> (i32, i32) {
    %c0_i32 = arith.constant 0 : i32
    %c0_i32_0 = arith.constant 0 : i32
    %c0_i32_1 = arith.constant 0 : i32
    return %c0_i32, %c0_i32_0 : i32, i32
  }
  func.func @transform_4(%arg0: i32, %arg1: i32) -> (i32, i32, i32) {
    %c0_i32 = arith.constant 0 : i32
    %c0_i32_0 = arith.constant 0 : i32
    return %arg0, %c0_i32, %arg1 : i32, i32, i32
  }
}

</mosaic_0001>

<bundles_post_ra>
// kernel: conv2d_bn_leakyrelu.1
= control target key start
LH: loop header
LB: loop body
LE: loop exit
PB: predicated region body
PF: predicated region fallthrough
CT: control target
= control target key end

     0   :  { %s2001_s15 = smov 0   ;;  %s2003_s16 = smov 0   ;;  %s3002_s0 = inlined_call_operand.vmem [shape: bf16[2,18,18,4], index: 0, kind: input, shape index: {}]   ;;  %s3003_s1 = inlined_call_operand.vmem [shape: bf16[8,36], index: 1, kind: input, shape index: {}]   ;;  %s3004_s2 = inlined_call_operand.vmem [shape: f32[8,1], index: 2, kind: input, shape index: {}]   ;;  %s3005_s3 = inlined_call_operand.vmem [shape: f32[8,1], index: 3, kind: input, shape index: {}]   ;;  %s3006_s4 = inlined_call_operand.vmem [shape: f32[2,8,256], index: 4, kind: output, shape index: {}]  }
   0x1   :  { %s2005_s17 = smov 0  }
   0x2 LB: > { %s26_s18 = sadd.s32 1, %s1961_s16  ;;  %p1783_p0 = scmp.ge.s32.totalorder %s1965_s17, 1  ;;  %s1965_s17 = sphi %s2005_s17, %s14_s17   ;;  %s1961_s16 = sphi %s2003_s16, %s3012_s16   ;;  %s1957_s15 = sphi %s2001_s15, %s3011_s15  }
   0x3   : > { %p28_p1 = scmp.ge.s32.totalorder %s26_s18, 2  ;;  %p176_p2 = scmp.lt.s32.totalorder %s1965_s17, 3 }
   0x5   : > { %s3014_s18 = smov (%p28_p1, %s26_s18), 0  ;;  %p177_p3 = pnand %p1783_p0, %p176_p2 }
   0x6   : > { %p206_p4 = scmp.lt.s32.totalorder (!%p177_p3), %s1957_s15, 1  ;;  %vm715_vm0 = vcmask (!%p177_p3), 1042432   ;;  %vm716_vm1 = vcmask (!%p177_p3), 1046532   ;;  %s1967_s23 = smov (!%p177_p3), 12   ;;  %vm280_vm3 = vsmask.f32 (!%p177_p3), 3328 }
   0x7   : > { %180 = sbr.rel (%p177_p3) target bundleno = 633 (0x279), region = 36  ;;  %vm2053_vm2 = vmor (!%p177_p3), %vm715_vm0, %vm716_vm1  ;;  %vm281_vm4 = vsmask.f32 (!%p177_p3), 7440  ;;  %s1968_s24 = smov (!%p177_p3), 20   ;;  %vm1316_vm6 = vcmask (!%p177_p3), 31744   ;;  %vm1365_vm7 = vcmask (!%p177_p3), 64512  }
   0x8   : > { %s1969_s25 = smov (!%p177_p3), 8   ;;  %vm2116_vm5 = vmor (!%p177_p3), %vm280_vm3, %vm281_vm4  ;;  %s1970_s26 = smov (!%p177_p3), 4   ;;  %vm1398_vm8 = vcmask (!%p177_p3), 97280   ;;  %vm1431_vm9 = vcmask (!%p177_p3), 130048   ;;  %vm1464_vm10 = vcmask (!%p177_p3), 162816   ;;  %vm1497_vm11 = vcmask (!%p177_p3), 195584  }
   0x9   : > { %s1971_s27 = smov (!%p177_p3), 16   ;;  %s1972_s28 = smov (!%p177_p3), 24   ;;  %vm1530_vm12 = vcmask (!%p177_p3), 228352   ;;  %vm1563_vm13 = vcmask (!%p177_p3), 261120   ;;  %vm1597_vm14 = vcmask (!%p177_p3), 293888   ;;  %v1682_v13 = vld [vmem:[%s3005_s3] sm:$0xff] (!%p177_p3) }
   0xa   : > { %s1973_s29 = smov (!%p177_p3), 28   ;;  %s1974_s30 = smov (!%p177_p3), 32  }
   0xe   : > { %s3016_s15 = smov (!%p206_p4, %s1957_s15), 1 }
   0xf   : > { %s1889_s19 = smul.u32 216, %s3016_s15  ;;  %s1862_s11 = sshll.u32 %s3016_s15, 4 }
  0x10   : > { %s219_s14 = scalar_lea.vmem %s3006_s4, %s1862_s11 }
  0x11   : > { %s2025_s22 = scalar_lea.vmem %s3002_s0, %s1889_s19 }
  0x12   : > { %v2028_v0 = vld [vmem:[%s2025_s22 + $0x6c] sm:$0xf]  ;;  %v2031_v1 = vld [vmem:[%s2025_s22 + $0x70] sm:$0xf]  ;;  %v2050_v12 = vld [vmem:[%s2025_s22 + $0x14] sm:$0x1] }
  0x13   : > { %v229_v2 = vld [vmem:[%s2025_s22 + $0xc] sm:$0xf]  ;;  %v513_v3 = vshrl.u32 %v2031_v1, 16  ;;  %v2037_v4 = vcombine.low %v2028_v0, %v2031_v1  ;;  %v500_v5 = vshrl.u32 %v2028_v0, 16  ;;  %v503_v6 = vshll.u32 %v2028_v0, 16 }
  0x14   : > { %v2042_v7 = vld [vmem:[%s2025_s22 + $0x10] sm:$0xf]  ;;  %v308_v11 = vshrl.u32 %v229_v2, 16  ;;  %v311_v14 = vshll.u32 %v229_v2, 16  ;;  %v1788_v15 = vrot.slane %v229_v2, 9  ;;  %v730_v17 = vrot.slane %v2050_v12, 5 }
  0x15   : > { %v317_v8 = vshll.u32 %v2042_v7, 16  ;;  %v321_v9 = vshrl.u32 %v2042_v7, 16  ;;  %v2047_v10 = vcombine.low %v229_v2, %v2042_v7  ;;  %1125 = vrot.lane.b32.xlu1 %v2037_v4, %s1967_s23  ;;  %v727_v16 = vrot.slane %v2042_v7, 5  ;;  %v2062_v18 = vld [vmem:[%s2025_s22] sm:$0xf] }
  0x16   : > { %v2068_v20 = vrot.slane %v308_v11, 4  ;;  %v2071_v21 = vld [vmem:[%s2025_s22 + $0x4] sm:$0xf]  ;;  %v228_v22 = vld [vmem:[%s2025_s22 + $0x8] sm:$0x1]  ;;  %v2074_v23 = vrot.slane %v311_v14, 5 }
  0x17   : > { %v2064_v19 = vrot.slane %v321_v9, 4  ;;  %1109 = vrot.lane.b32.xlu0 %v2047_v10, %s1967_s23  ;;  %v728_v24 = vsel %vm2053_vm2, %v1788_v15, %v727_v16  ;;  %v729_v25 = vrot.slane %v727_v16, 4  ;;  %v1787_v26 = vrot.slane %v2062_v18, 9  ;;  %v2080_v27 = vld [vmem:[%s2025_s22 + $0x60] sm:$0xf] }
  0x18   : > { %v720_v28 = vrot.slane %v2071_v21, 5  ;;  %v723_v29 = vrot.slane %v228_v22, 5  ;;  %v2084_v30 = vld [vmem:[%s2025_s22 + $0x64] sm:$0xf]  ;;  %v252_v31 = vld [vmem:[%s2025_s22 + $0x68] sm:$0x1] }
  0x19   : > { %v731_v32 = vsel %vm2053_vm2, %v729_v25, %v730_v17  ;;  %v1795_v33 = vrot.slane %v2080_v27, 9  ;;  %v776_v34 = vrot.slane %v2084_v30, 5  ;;  %v779_v35 = vrot.slane %v252_v31, 5  ;;  %v255_v48 = vld [vmem:[%s2025_s22 + $0x74] sm:$0x1] }
  0x1a   : > { %v2091_v36 = vcombine.low %v728_v24, %v731_v32  ;;  %v721_v37 = vsel %vm2053_vm2, %v1787_v26, %v720_v28  ;;  %v722_v38 = vrot.slane %v720_v28, 4  ;;  %v284_v39 = vshrl.u32 %v2062_v18, 16 }
  0x1b   : > { %v777_v40 = vsel %vm2053_vm2, %v1795_v33, %v776_v34  ;;  %v778_v41 = vrot.slane %v776_v34, 4  ;;  %v287_v42 = vshll.u32 %v2062_v18, 16  ;;  %v293_v43 = vshll.u32 %v2071_v21, 16 }
  0x1c   : > { %1179 = vrot.lane.b32.xlu0 %v2091_v36, %s1968_s24  ;;  %v724_v44 = vsel %vm2053_vm2, %v722_v38, %v723_v29  ;;  %v286_v45 = vrot.slane %v284_v39, 4  ;;  %v297_v46 = vshrl.u32 %v2071_v21, 16  ;;  %v303_v47 = vshll.u32 %v228_v22, 16 }
  0x1d   : > { %v1837_v49 = vcombine.low %v721_v37, %v724_v44  ;;  %v780_v50 = vsel %vm2053_vm2, %v778_v41, %v779_v35  ;;  %v289_v51 = vrot.slane %v287_v42, 5  ;;  %v295_v52 = vrot.slane %v293_v43, 5 }
  0x1e   : > { %v2108_v53 = vcombine.low %v777_v40, %v780_v50  ;;  %v299_v54 = vrot.slane %v297_v46, 4  ;;  %v305_v55 = vrot.slane %v303_v47, 5  ;;  %v1796_v56 = vrot.slane %v2028_v0, 9  ;;  %v2150_v46 = vld [vmem:[%s2025_s22 + $0x78] sm:$0xf] }
  0x1f   : > { %1074 = vrot.lane.b32.xlu1 %v1837_v49, %s1969_s25  ;;  %v290_v57 = vor.u32 %v289_v51, %v286_v45  ;;  %v783_v58 = vrot.slane %v2031_v1, 5  ;;  %v786_v59 = vrot.slane %v255_v48, 5  ;;  %v476_v60 = vshrl.u32 %v2080_v27, 16  ;;  %v2158_v49 = vld [vmem:[%s2025_s22 + $0x7c] sm:$0xf] }
  0x20   : > { %v300_v62 = vor.u32 %v299_v54, %v295_v52  ;;  %v479_v63 = vshll.u32 %v2080_v27, 16  ;;  %v485_v2 = vshll.u32 %v2084_v30, 16  ;;  %v489_v9 = vshrl.u32 %v2084_v30, 16 }
  0x21   : > { %v291_v11 = vrot.slane %v290_v57, 4  ;;  %v784_v14 = vsel %vm2053_vm2, %v1796_v56, %v783_v58  ;;  %v785_v15 = vrot.slane %v783_v58, 4  ;;  %v478_v16 = vrot.slane %v476_v60, 4  ;;  %v2169_v56 = vld [vmem:[%s2025_s22 + $0x1c] sm:$0xf] }
  0x22   : > { %v301_v17 = vrot.slane %v300_v62, 4  ;;  %v481_v22 = vrot.slane %v479_v63, 5  ;;  %v487_v24 = vrot.slane %v485_v2, 5  ;;  %v491_v25 = vrot.slane %v489_v9, 4  ;;  %v258_v2 = vld [vmem:[%s2025_s22 + $0x80] sm:$0x1] }
  0x23   : > { %1090 = vrot.lane.b32.xlu1 %v2108_v53, %s1969_s25  ;;  %v296_v26 = vsel %vm2116_vm5, %v291_v11, %v295_v52  ;;  %v787_v28 = vsel %vm2053_vm2, %v785_v15, %v786_v59  ;;  %v495_v29 = vshll.u32 %v252_v31, 16  ;;  %v502_v32 = vrot.slane %v500_v5, 4 }
  0x24   : > { %v306_v33 = vsel %vm2116_vm5, %v301_v17, %v305_v55  ;;  %v2135_v34 = vcombine.low %v784_v14, %v787_v28  ;;  %v482_v35 = vor.u32 %v481_v22, %v478_v16  ;;  %v492_v37 = vor.u32 %v491_v25, %v487_v24  ;;  %v234_v25 = vld [vmem:[%s2025_s22 + $0x20] sm:$0x1] }
  0x25   : > { %v1821_v38 = vcombine.low %v296_v26, %v306_v33  ;;  %v497_v39 = vrot.slane %v495_v29, 5  ;;  %v505_v40 = vrot.slane %v503_v6, 5  ;;  %v509_v41 = vshll.u32 %v2031_v1, 16 }
  0x26   : > { %v483_v42 = vrot.slane %v482_v35, 4  ;;  %v493_v31 = vrot.slane %v492_v37, 4  ;;  %v515_v5 = vrot.slane %v513_v3, 4  ;;  %v519_v43 = vshll.u32 %v255_v48, 16 }
  0x27   : > { %994 = vrot.lane.b32.xlu0 %v1821_v38, %s1970_s26  ;;  %1195 = vrot.lane.b32.xlu1 %v2135_v34, %s1968_s24  ;;  %v506_v44 = vor.u32 %v505_v40, %v502_v32  ;;  %v511_v45 = vrot.slane %v509_v41, 5  ;;  %v314_v0 = vor.u32 %v2074_v23, %v2068_v20  ;;  %v319_v6 = vrot.slane %v317_v8, 5  ;;  %v2163_v8 = vld [vmem:[%s2025_s22 + $0x18] sm:$0xf] }
  0x28   : > { %v488_v1 = vsel %vm2116_vm5, %v483_v42, %v487_v24  ;;  %v498_v3 = vsel %vm2116_vm5, %v493_v31, %v497_v39  ;;  %v521_v47 = vrot.slane %v519_v43, 5  ;;  %v327_v48 = vshll.u32 %v2050_v12, 16 }
  0x29   : > { %v2160_v50 = vcombine.low %v488_v1, %v498_v3  ;;  %v507_v20 = vrot.slane %v506_v44, 4  ;;  %v516_v23 = vor.u32 %v515_v5, %v511_v45  ;;  %v315_v7 = vrot.slane %v314_v0, 4 }
  0x2a   : > { %v324_v51 = vor.u32 %v2064_v19, %v319_v6  ;;  %v329_v52 = vrot.slane %v327_v48, 5  ;;  %v524_v54 = vshrl.u32 %v2150_v46, 16  ;;  %v527_v55 = vshll.u32 %v2150_v46, 16 }
  0x2b   : > { %1010 = vrot.lane.b32.xlu0 %v2160_v50, %s1970_s26  ;;  %v512_v12 = vsel %vm2116_vm5, %v507_v20, %v511_v45  ;;  %v517_v57 = vrot.slane %v516_v23, 4  ;;  %v320_v58 = vsel %vm2116_vm5, %v315_v7, %v319_v6  ;;  %v537_v19 = vshrl.u32 %v2158_v49, 16 }
  0x2c   : > { %v325_v59 = vrot.slane %v324_v51, 4  ;;  %v2180_v60 = vcombine.low %v2150_v46, %v2158_v49  ;;  %v332_v62 = vshrl.u32 %v2163_v8, 16  ;;  %v335_v63 = vshll.u32 %v2163_v8, 16 }
  0x2d   : > { %v522_v9 = vsel %vm2116_vm5, %v517_v57, %v521_v47  ;;  %v345_v11 = vshrl.u32 %v2169_v56, 16  ;;  %v2190_v14 = vcombine.low %v2163_v8, %v2169_v56  ;;  %v526_v15 = vrot.slane %v524_v54, 4 }
  0x2e   : > { %v2192_v16 = vcombine.low %v512_v12, %v522_v9  ;;  %v330_v17 = vsel %vm2116_vm5, %v325_v59, %v329_v52  ;;  %v529_v22 = vrot.slane %v527_v55, 5  ;;  %v533_v24 = vshll.u32 %v2158_v49, 16  ;;  %v2247_v9 = vld [vmem:[%s2025_s22 + $0x24] sm:$0xf] }
  0x2f   : > { %v1822_v26 = vcombine.low %v320_v58, %v330_v17  ;;  %v539_v28 = vrot.slane %v537_v19, 4  ;;  %v543_v29 = vshll.u32 %v258_v2, 16  ;;  %v334_v32 = vrot.slane %v332_v62, 4 }
  0x30   : > { %1160 = vrot.lane.b32.xlu1 %v2192_v16, %s1971_s27  ;;  %v530_v33 = vor.u32 %v529_v22, %v526_v15  ;;  %v535_v35 = vrot.slane %v533_v24, 5  ;;  %v337_v37 = vrot.slane %v335_v63, 5  ;;  %v341_v38 = vshll.u32 %v2169_v56, 16  ;;  %v259_v63 = vld [vmem:[%s2025_s22 + $0x84] sm:$0xf] }
  0x31   : > { %1144 = vrot.lane.b32.xlu0 %v1822_v26, %s1971_s27  ;;  %v545_v39 = vrot.slane %v543_v29, 5  ;;  %v347_v40 = vrot.slane %v345_v11, 4  ;;  %v351_v41 = vshll.u32 %v234_v25, 16  ;;  %v1797_v42 = vrot.slane %v2150_v46, 9  ;;  %v2250_v11 = vld [vmem:[%s2025_s22 + $0x28] sm:$0xf] }
  0x32   : > { %v531_v31 = vrot.slane %v530_v33, 4  ;;  %v540_v5 = vor.u32 %v539_v28, %v535_v35  ;;  %v338_v43 = vor.u32 %v337_v37, %v334_v32  ;;  %v343_v44 = vrot.slane %v341_v38, 5 }
  0x33   : > { %v353_v45 = vrot.slane %v351_v41, 5  ;;  %v790_v0 = vrot.slane %v2158_v49, 5  ;;  %v793_v6 = vrot.slane %v258_v2, 5  ;;  %v1789_v1 = vrot.slane %v2163_v8, 9  ;;  %v260_v2 = vld [vmem:[%s2025_s22 + $0x88] sm:$0xf] }
  0x34   : > { %1230 = vrot.lane.b32.xlu1 %v2180_v60, %s1972_s28  ;;  %v536_v3 = vsel %vm2116_vm5, %v531_v31, %v535_v35  ;;  %v541_v47 = vrot.slane %v540_v5, 4  ;;  %v339_v48 = vrot.slane %v338_v43, 4  ;;  %v348_v46 = vor.u32 %v347_v40, %v343_v44  ;;  %v237_v31 = vld [vmem:[%s2025_s22 + $0x2c] sm:$0x1] }
  0x35   : > { %1214 = vrot.lane.b32.xlu0 %v2190_v14, %s1972_s28  ;;  %v792_v20 = vrot.slane %v790_v0, 4  ;;  %v734_v23 = vrot.slane %v2169_v56, 5  ;;  %v737_v49 = vrot.slane %v234_v25, 5  ;;  %v791_v52 = vsel %vm2053_vm2, %v1797_v42, %v790_v0 }
  0x36   : > { %v546_v7 = vsel %vm2116_vm5, %v541_v47, %v545_v39  ;;  %v344_v8 = vsel %vm2116_vm5, %v339_v48, %v343_v44  ;;  %v349_v51 = vrot.slane %v348_v46, 4  ;;  %v548_v15 = vshrl.u32 %v259_v63, 16 }
  0x37   : > { %v2218_v54 = vcombine.low %v536_v3, %v546_v7  ;;  %v794_v55 = vsel %vm2053_vm2, %v792_v20, %v793_v6  ;;  %v736_v12 = vrot.slane %v734_v23, 4  ;;  %v735_v57 = vsel %vm2053_vm2, %v1789_v1, %v734_v23 }
  0x38   : > { %v354_v56 = vsel %vm2116_vm5, %v349_v51, %v353_v45  ;;  %v2230_v19 = vcombine.low %v791_v52, %v794_v55  ;;  %v551_v17 = vshll.u32 %v259_v63, 16  ;;  %v561_v22 = vshrl.u32 %v260_v2, 16 }
  0x39   : > { %1265 = vrot.lane.b32.xlu1 %v2218_v54, %s1973_s29  ;;  %v2228_v58 = vcombine.low %v344_v8, %v354_v56  ;;  %v738_v59 = vsel %vm2053_vm2, %v736_v12, %v737_v49  ;;  %v557_v24 = vshll.u32 %v260_v2, 16  ;;  %v356_v25 = vshrl.u32 %v2247_v9, 16 }
  0x3a   : > { %v2236_v62 = vcombine.low %v735_v57, %v738_v59  ;;  %v359_v28 = vshll.u32 %v2247_v9, 16  ;;  %v369_v29 = vshrl.u32 %v2250_v11, 16  ;;  %v365_v32 = vshll.u32 %v2250_v11, 16 }
  0x3b   : > { %1249 = vrot.lane.b32.xlu0 %v2228_v58, %s1973_s29  ;;  %v550_v33 = vrot.slane %v548_v15, 4  ;;  %v553_v35 = vrot.slane %v551_v17, 5  ;;  %v559_v37 = vrot.slane %v557_v24, 5  ;;  %v563_v38 = vrot.slane %v561_v22, 4 }
  0x3c   : > { %v358_v39 = vrot.slane %v356_v25, 4  ;;  %v361_v40 = vrot.slane %v359_v28, 5  ;;  %v367_v41 = vrot.slane %v365_v32, 5  ;;  %v371_v42 = vrot.slane %v369_v29, 4  ;;  %v262_v32 = vld [vmem:[%s2025_s22 + $0x90] sm:$0xf] }
  0x3d   : > { %1300 = vrot.lane.b32.xlu1 %v2230_v19, %s1974_s30  ;;  %v554_v5 = vor.u32 %v553_v35, %v550_v33  ;;  %v564_v43 = vor.u32 %v563_v38, %v559_v37  ;;  %v375_v6 = vshll.u32 %v237_v31, 16  ;;  %v797_v47 = vrot.slane %v260_v2, 5  ;;  %v263_v33 = vld [vmem:[%s2025_s22 + $0x94] sm:$0xf]  ;;  %v2326_v35 = vld [vmem:[%s2025_s22 + $0x30] sm:$0xf] }
  0x3e   : > { %v362_v45 = vor.u32 %v361_v40, %v358_v39  ;;  %v372_v0 = vor.u32 %v371_v42, %v367_v41  ;;  %v741_v23 = vrot.slane %v2250_v11, 5  ;;  %v2274_v49 = vcombine.low %v259_v63, %v260_v2 }
  0x3f   : > { %1284 = vrot.lane.b32.xlu0 %v2236_v62, %s1974_s30  ;;  %v565_v1 = vrot.slane %v564_v43, 4  ;;  %v377_v20 = vrot.slane %v375_v6, 5  ;;  %v1798_v7 = vrot.slane %v259_v63, 9  ;;  %v799_v52 = vrot.slane %v797_v47, 4 }
  0x40   : > { %v363_v48 = vrot.slane %v362_v45, 4  ;;  %v373_v46 = vrot.slane %v372_v0, 4  ;;  %v2284_v12 = vcombine.low %v2247_v9, %v2250_v11  ;;  %v1790_v56 = vrot.slane %v2247_v9, 9  ;;  %v264_v0 = vld [vmem:[%s2025_s22 + $0x98] sm:$0x1] }
  0x41   : > { %1012 = vrot.lane.b32.xlu1 %v2192_v16, %s1970_s26  ;;  %v743_v63 = vrot.slane %v741_v23, 4  ;;  %v744_v2 = vrot.slane %v237_v31, 5  ;;  %v798_v11 = vsel %vm2053_vm2, %v1798_v7, %v797_v47  ;;  %v1805_v22 = vcombine.low %v2062_v18, %v2071_v21 }
  0x42   : > { %v368_v57 = vsel %vm2116_vm5, %v363_v48, %v367_v41  ;;  %v378_v59 = vsel %vm2116_vm5, %v373_v46, %v377_v20  ;;  %v742_v24 = vsel %vm2053_vm2, %v1790_v56, %v741_v23  ;;  %v572_v38 = vshrl.u32 %v262_v32, 16 }
  0x43   : > { %996 = vrot.lane.b32.xlu0 %v1822_v26, %s1970_s26  ;;  %v261_v26 = vld [vmem:[%s2025_s22 + $0x8c] sm:$0x1]  ;;  %v2301_v17 = vcombine.low %v368_v57, %v378_v59  ;;  %v745_v25 = vsel %vm2053_vm2, %v743_v63, %v744_v2  ;;  %v585_v39 = vshrl.u32 %v263_v33, 16  ;;  %v581_v40 = vshll.u32 %v263_v33, 16 }
  0x44   : > { %v567_v44 = vshll.u32 %v261_v26, 16  ;;  %v800_v55 = vrot.slane %v261_v26, 5  ;;  %v2315_v29 = vcombine.low %v742_v24, %v745_v25  ;;  %v575_v26 = vshll.u32 %v262_v32, 16 }
  0x45   : > { %1092 = vrot.lane.b32.xlu1 %v2135_v34, %s1969_s25  ;;  %v380_v41 = vshrl.u32 %v2326_v35, 16  ;;  %v383_v42 = vshll.u32 %v2326_v35, 16  ;;  %v587_v45 = vrot.slane %v585_v39, 4  ;;  %v591_v46 = vshll.u32 %v264_v0, 16 }
  0x46   : > { %v569_v3 = vrot.slane %v567_v44, 5  ;;  %v801_v9 = vsel %vm2053_vm2, %v799_v52, %v800_v55  ;;  %v577_v43 = vrot.slane %v575_v26, 5  ;;  %v583_v44 = vrot.slane %v581_v40, 5 }
  0x47   : > { %1076 = vrot.lane.b32.xlu0 %v2091_v36, %s1969_s25  ;;  %v555_v36 = vrot.slane %v554_v5, 4  ;;  %v2311_v28 = vcombine.low %v798_v11, %v801_v9  ;;  %v382_v6 = vrot.slane %v380_v41, 4  ;;  %v2349_v59 = vcombine.low %v262_v32, %v263_v33 }
  0x48   : > { %v570_v51 = vsel %vm2116_vm5, %v565_v1, %v569_v3  ;;  %v240_v3 = vld [vmem:[%s2025_s22 + $0x38] sm:$0x1]  ;;  %v588_v48 = vor.u32 %v587_v45, %v583_v44  ;;  %v1799_v63 = vrot.slane %v262_v32, 9  ;;  %v807_v24 = vrot.slane %v264_v0, 5  ;;  %v2400_v45 = vld [vmem:[%s2025_s22 + $0x3c] sm:$0xf] }
  0x49   : > { %1127 = vrot.lane.b32.xlu1 %v2180_v60, %s1967_s23  ;;  %v560_v8 = vsel %vm2116_vm5, %v555_v36, %v559_v37  ;;  %v239_v37 = vld [vmem:[%s2025_s22 + $0x34] sm:$0xf]  ;;  %v399_v23 = vshll.u32 %v240_v3, 16  ;;  %v751_v39 = vrot.slane %v240_v3, 5  ;;  %v2405_v0 = vld [vmem:[%s2025_s22 + $0x40] sm:$0xf] }
  0x4a   : > { %v2293_v15 = vcombine.low %v560_v8, %v570_v51  ;;  %v393_v31 = vshrl.u32 %v239_v37, 16  ;;  %v389_v5 = vshll.u32 %v239_v37, 16  ;;  %v589_v7 = vrot.slane %v588_v48, 4 }
  0x4b   : > { %1111 = vrot.lane.b32.xlu0 %v2190_v14, %s1967_s23  ;;  %v593_v8 = vrot.slane %v591_v46, 5  ;;  %v804_v51 = vrot.slane %v263_v33, 5  ;;  %v401_v56 = vrot.slane %v399_v23, 5  ;;  %v748_v57 = vrot.slane %v239_v37, 5 }
  0x4c   : > { %v391_v36 = vrot.slane %v389_v5, 5  ;;  %v395_v1 = vrot.slane %v393_v31, 4  ;;  %v2358_v25 = vcombine.low %v2326_v35, %v239_v37  ;;  %v404_v3 = vshrl.u32 %v2400_v45, 16 }
  0x4d   : > { %1162 = vrot.lane.b32.xlu1 %v2218_v54, %s1971_s27  ;;  %v594_v11 = vsel %vm2116_vm5, %v589_v7, %v593_v8  ;;  %v806_v9 = vrot.slane %v804_v51, 4  ;;  %v750_v26 = vrot.slane %v748_v57, 4  ;;  %v805_v37 = vsel %vm2053_vm2, %v1799_v63, %v804_v51 }
  0x4e   : > { %v396_v20 = vor.u32 %v395_v1, %v391_v36  ;;  %v413_v48 = vshll.u32 %v2405_v0, 16 }
  0x4f   : > { %1146 = vrot.lane.b32.xlu0 %v2228_v58, %s1971_s27  ;;  %v752_v31 = vsel %vm2053_vm2, %v750_v26, %v751_v39 }
  0x50   : > { %v397_v55 = vrot.slane %v396_v20, 4  ;;  %v415_v8 = vrot.slane %v413_v48, 5 }
  0x51   : > { %1197 = vrot.lane.b32.xlu1 %v2230_v19, %s1968_s24 }
  0x52   : > { %v402_v32 = vsel %vm2116_vm5, %v397_v55, %v401_v56 }
  0x53   : > { %1181 = vrot.lane.b32.xlu0 %v2236_v62, %s1968_s24 }
  0x55   : > { %1232 = vrot.lane.b32.xlu1 %v2274_v49, %s1972_s28 }
  0x57   : > { %1216 = vrot.lane.b32.xlu0 %v2284_v12, %s1972_s28 }
  0x59   : > { %1267 = vrot.lane.b32.xlu1 %v2293_v15, %s1973_s29 }
  0x5b   : > { %1251 = vrot.lane.b32.xlu0 %v2301_v17, %s1973_s29 }
  0x5d   : > { %1302 = vrot.lane.b32.xlu1 %v2311_v28, %s1974_s30 }
  0x5f   : > { %1286 = vrot.lane.b32.xlu0 %v2315_v29, %s1974_s30 }
  0x61   : > { %1014 = vrot.lane.b32.xlu1 %v2218_v54, %s1970_s26  ;;  %v574_v54 = vrot.slane %v572_v38, 4  ;;  %v1791_v38 = vrot.slane %v2326_v35, 9  ;;  %v808_v35 = vsel %vm2053_vm2, %v806_v9, %v807_v24 }
  0x62   : > { %v2383_v5 = vcombine.low %v805_v37, %v808_v35  ;;  %v755_v37 = vrot.slane %v2405_v0, 5 }
  0x63   : > { %998 = vrot.lane.b32.xlu0 %v2228_v58, %s1970_s26  ;;  %v385_v58 = vrot.slane %v383_v42, 5  ;;  %v578_v47 = vor.u32 %v577_v43, %v574_v54  ;;  %v749_v42 = vsel %vm2053_vm2, %v1791_v38, %v748_v57  ;;  %v2394_v43 = vld [vmem:[%s2025_s22 + $0x9c] sm:$0xf] }
  0x64   : > { %v2387_v54 = vcombine.low %v749_v42, %v752_v31  ;;  %v1800_v31 = vrot.slane %v2394_v43, 9  ;;  %v757_v48 = vrot.slane %v755_v37, 4 }
  0x65   : > { %1094 = vrot.lane.b32.xlu1 %v2230_v19, %s1969_s25  ;;  %v386_v19 = vor.u32 %v385_v58, %v382_v6  ;;  %v596_v6 = vshrl.u32 %v2394_v43, 16  ;;  %v599_v58 = vshll.u32 %v2394_v43, 16 }
  0x67   : > { %1078 = vrot.lane.b32.xlu0 %v2236_v62, %s1969_s25  ;;  %v579_v62 = vrot.slane %v578_v47, 4  ;;  %v387_v52 = vrot.slane %v386_v19, 4  ;;  %v407_v47 = vshll.u32 %v2400_v45, 16  ;;  %v598_v46 = vrot.slane %v596_v6, 4 }
  0x68   : > { %v601_v19 = vrot.slane %v599_v58, 5 }
  0x69   : > { %1129 = vrot.lane.b32.xlu1 %v2274_v49, %s1967_s23  ;;  %v584_v2 = vsel %vm2116_vm5, %v579_v62, %v583_v44  ;;  %v392_v33 = vsel %vm2116_vm5, %v387_v52, %v391_v36  ;;  %v2397_v44 = vld [vmem:[%s2025_s22 + $0xa0] sm:$0xf]  ;;  %v406_v62 = vrot.slane %v404_v3, 4  ;;  %v409_v7 = vrot.slane %v407_v47, 5  ;;  %v243_v52 = vld [vmem:[%s2025_s22 + $0x44] sm:$0x1] }
  0x6a   : > { %v2367_v40 = vcombine.low %v584_v2, %v594_v11  ;;  %v2375_v41 = vcombine.low %v392_v33, %v402_v32  ;;  %v609_v36 = vshrl.u32 %v2397_v44, 16  ;;  %v605_v1 = vshll.u32 %v2397_v44, 16 }
  0x6b   : > { %1113 = vrot.lane.b32.xlu0 %v2284_v12, %s1967_s23  ;;  %v602_v55 = vor.u32 %v601_v19, %v598_v46  ;;  %v410_v63 = vor.u32 %v409_v7, %v406_v62  ;;  %v811_v33 = vrot.slane %v2397_v44, 5  ;;  %v2441_v35 = vcombine.low %v2394_v43, %v2397_v44 }
  0x6c   : > { %v607_v20 = vrot.slane %v605_v1, 5  ;;  %v611_v23 = vrot.slane %v609_v36, 4  ;;  %v2454_v3 = vcombine.low %v2400_v45, %v2405_v0  ;;  %v758_v46 = vrot.slane %v243_v52, 5 }
  0x6d   : > { %1164 = vrot.lane.b32.xlu1 %v2293_v15, %s1971_s27  ;;  %v603_v9 = vrot.slane %v602_v55, 4  ;;  %v411_v32 = vrot.slane %v410_v63, 4  ;;  %v813_v36 = vrot.slane %v811_v33, 4  ;;  %v2491_v55 = vcombine.low %v2080_v27, %v2084_v30  ;;  %v2499_v63 = vld [vmem:[%s2025_s22 + $0xac] sm:$0xf] }
  0x6e   : > { %v612_v56 = vor.u32 %v611_v23, %v607_v20  ;;  %v759_v62 = vsel %vm2053_vm2, %v757_v48, %v758_v46  ;;  %v2540_v48 = vld [vmem:[%s2025_s22 + $0x50] sm:$0x1] }
  0x6f   : > { %1148 = vrot.lane.b32.xlu0 %v2301_v17, %s1971_s27  ;;  %v608_v6 = vsel %vm2116_vm5, %v603_v9, %v607_v20  ;;  %v416_v43 = vsel %vm2116_vm5, %v411_v32, %v415_v8  ;;  %v2509_v9 = vld [vmem:[%s2025_s22 + $0x4c] sm:$0xf] }
  0x70   : > { %v613_v24 = vrot.slane %v612_v56, 4 }
  0x71   : > { %1199 = vrot.lane.b32.xlu1 %v2311_v28, %s1968_s24 }
  0x73   : > { %1183 = vrot.lane.b32.xlu0 %v2315_v29, %s1968_s24 }
  0x75   : > { %1234 = vrot.lane.b32.xlu1 %v2349_v59, %s1972_s28 }
  0x77   : > { %1218 = vrot.lane.b32.xlu0 %v2358_v25, %s1972_s28 }
  0x79   : > { %1269 = vrot.lane.b32.xlu1 %v2367_v40, %s1973_s29 }
  0x7b   : > { %1253 = vrot.lane.b32.xlu0 %v2375_v41, %s1973_s29 }
  0x7d   : > { %1304 = vrot.lane.b32.xlu1 %v2383_v5, %s1974_s30 }
  0x7f   : > { %1288 = vrot.lane.b32.xlu0 %v2387_v54, %s1974_s30 }
  0x81   : > { %1016 = vrot.lane.b32.xlu1 %v2293_v15, %s1970_s26  ;;  %v417_v15 = vshrl.u32 %v2405_v0, 16  ;;  %v812_v0 = vsel %vm2053_vm2, %v1800_v31, %v811_v33  ;;  %v629_v33 = vshll.u32 %v2499_v63, 16  ;;  %v437_v31 = vshll.u32 %v2509_v9, 16 }
  0x83   : > { %1000 = vrot.lane.b32.xlu0 %v2301_v17, %s1970_s26  ;;  %v267_v17 = vld [vmem:[%s2025_s22 + $0xa4] sm:$0x1]  ;;  %v419_v51 = vrot.slane %v417_v15, 4  ;;  %v1792_v15 = vrot.slane %v2400_v45, 9  ;;  %v2542_v46 = vrot.slane %v437_v31, 5 }
  0x84   : > { %v615_v57 = vshll.u32 %v267_v17, 16  ;;  %v814_v1 = vrot.slane %v267_v17, 5 }
  0x85   : > { %1096 = vrot.lane.b32.xlu1 %v2311_v28, %s1969_s25  ;;  %v420_v2 = vor.u32 %v419_v51, %v415_v8  ;;  %v756_v17 = vsel %vm2053_vm2, %v1792_v15, %v755_v37  ;;  %v441_v37 = vshrl.u32 %v2509_v9, 16 }
  0x86   : > { %v617_v38 = vrot.slane %v615_v57, 5  ;;  %v815_v23 = vsel %vm2053_vm2, %v813_v36, %v814_v1  ;;  %v2485_v51 = vcombine.low %v756_v17, %v759_v62  ;;  %v2496_v57 = vld [vmem:[%s2025_s22 + $0xa8] sm:$0xf] }
  0x87   : > { %1080 = vrot.lane.b32.xlu0 %v2315_v29, %s1969_s25  ;;  %v2427_v28 = vpop.permute.xlu1 %1125  ;;  %v423_v29 = vshll.u32 %v243_v52, 16  ;;  %v421_v26 = vrot.slane %v420_v2, 4  ;;  %v2481_v8 = vcombine.low %v812_v0, %v815_v23  ;;  %v2502_v2 = vld [vmem:[%s2025_s22 + $0x48] sm:$0xf]  ;;  %v620_v30 = vshrl.u32 %v2496_v57, 16 }
  0x88   : > { %v618_v58 = vsel %vm2116_vm5, %v613_v24, %v617_v38  ;;  %v623_v24 = vshll.u32 %v2496_v57, 16  ;;  %v633_v38 = vshrl.u32 %v2499_v63, 16 }
  0x89   : > { %1131 = vrot.lane.b32.xlu1 %v2349_v59, %s1967_s23  ;;  %v2431_v11 = vpop.permute.xlu0 %1109  ;;  %v425_v39 = vrot.slane %v423_v29, 5  ;;  %v2465_v19 = vcombine.low %v608_v6, %v618_v58  ;;  %v2529_v58 = vld [vmem:[%s2025_s22 + $0xb0] sm:$0x1]  ;;  %v622_v36 = vrot.slane %v620_v30, 4 }
  0x8a   : > { %v625_v1 = vrot.slane %v623_v24, 5  ;;  %v639_v0 = vshll.u32 %v2529_v58, 16 }
  0x8b   : > { %1115 = vrot.lane.b32.xlu0 %v2358_v25, %s1967_s23  ;;  %v426_v47 = vsel %vm2116_vm5, %v421_v26, %v425_v39  ;;  %v428_v26 = vshrl.u32 %v2502_v2, 16 }
  0x8c   : > { %v2473_v45 = vcombine.low %v416_v43, %v426_v47  ;;  %v2531_v43 = vrot.slane %v629_v33, 5  ;;  %v635_v47 = vrot.slane %v633_v38, 4 }
  0x8d   : > { %1166 = vrot.lane.b32.xlu1 %v2367_v40, %s1971_s27  ;;  %v430_v21 = vrot.slane %v428_v26, 4  ;;  %v818_v26 = vrot.slane %v2499_v63, 5 }
  0x8e   : > { %v2456_v44 = vpop.permute.xlu0 %1179  ;;  %v636_v23 = vor.u32 %v635_v47, %v2531_v43 }
  0x8f   : > { %1150 = vrot.lane.b32.xlu0 %v2375_v41, %s1971_s27 }
  0x90   : > { %v637_v33 = vrot.slane %v636_v23, 4  ;;  %v765_v23 = vrot.slane %v2540_v48, 5 }
  0x91   : > { %1201 = vrot.lane.b32.xlu1 %v2383_v5, %s1968_s24  ;;  %v2443_v42 = vpop.permute.xlu1 %1074 }
  0x93   : > { %1185 = vrot.lane.b32.xlu0 %v2387_v54, %s1968_s24 }
  0x95   : > { %1236 = vrot.lane.b32.xlu1 %v2441_v35, %s1972_s28  ;;  %v1091_v20 = vpop.permute.xlu1 %1090 }
  0x97   : > { %1220 = vrot.lane.b32.xlu0 %v2454_v3, %s1972_s28 }
  0x99   : > { %1271 = vrot.lane.b32.xlu1 %v2465_v19, %s1973_s29  ;;  %v995_v7 = vpop.permute.xlu0 %994  ;;  %v1196_v52 = vpop.permute.xlu1 %1195 }
  0x9a   : > { %v1319_v6 = vsel %vm1316_vm6, %v1805_v22, %v995_v7  ;;  %v447_v7 = vshll.u32 %v2540_v48, 16 }
  0x9b   : > { %1255 = vrot.lane.b32.xlu0 %v2473_v45, %s1973_s29 }
  0x9d   : > { %1306 = vrot.lane.b32.xlu1 %v2481_v8, %s1974_s30  ;;  %v1011_v56 = vpop.permute.xlu0 %1010 }
  0x9e   : > { %v1343_v29 = vsel %vm1316_vm6, %v2491_v55, %v1011_v56 }
  0x9f   : > { %1290 = vrot.lane.b32.xlu0 %v2485_v51, %s1974_s30  ;;  %v1383_v39 = vsel %vm1365_vm7, %v1343_v29, %v1091_v20  ;;  %v443_v20 = vrot.slane %v441_v37, 4  ;;  %v449_v37 = vrot.slane %v447_v7, 5 }
  0xa0   : > { %v1416_v15 = vsel %vm1398_vm8, %v1383_v39, %v2427_v28 }
  0xa1   : > { %1018 = vrot.lane.b32.xlu1 %v2367_v40, %s1970_s26  ;;  %v431_v40 = vshll.u32 %v2502_v2, 16  ;;  %v444_v29 = vor.u32 %v443_v20, %v2542_v46  ;;  %v820_v20 = vrot.slane %v818_v26, 4 }
  0xa2   : > { %v1161_v27 = vpop.permute.xlu1 %1160 }
  0xa3   : > { %1002 = vrot.lane.b32.xlu0 %v2375_v41, %s1970_s26  ;;  %v1145_v32 = vpop.permute.xlu0 %1144  ;;  %v433_v22 = vrot.slane %v431_v40, 5  ;;  %v1449_v28 = vsel %vm1431_vm9, %v1416_v15, %v1161_v27  ;;  %v1801_v15 = vrot.slane %v2496_v57, 9 }
  0xa4   : > { %v1482_v27 = vsel %vm1464_vm10, %v1449_v28, %v1196_v52 }
  0xa5   : > { %1098 = vrot.lane.b32.xlu1 %v2383_v5, %s1969_s25  ;;  %v1367_v5 = vsel %vm1365_vm7, %v1319_v6, %v2443_v42  ;;  %v434_v62 = vor.u32 %v433_v22, %v430_v21 }
  0xa6   : > { %v1231_v41 = vpop.permute.xlu1 %1230  ;;  %v1400_v17 = vsel %vm1398_vm8, %v1367_v5, %v2431_v11  ;;  %v641_v11 = vrot.slane %v639_v0, 5 }
  0xa7   : > { %1082 = vrot.lane.b32.xlu0 %v2387_v54, %s1969_s25  ;;  %v1215_v18 = vpop.permute.xlu0 %1214  ;;  %v626_v54 = vor.u32 %v625_v1, %v622_v36  ;;  %v1433_v56 = vsel %vm1431_vm9, %v1400_v17, %v1145_v32  ;;  %v1515_v24 = vsel %vm1497_vm11, %v1482_v27, %v1231_v41  ;;  %v435_v39 = vrot.slane %v434_v62, 4 }
  0xa8   : > { %v1466_v32 = vsel %vm1464_vm10, %v1433_v56, %v2456_v44  ;;  %v445_v41 = vrot.slane %v444_v29, 4  ;;  %v762_v36 = vrot.slane %v2509_v9, 5  ;;  %v2575_v44 = vcombine.low %v2496_v57, %v2499_v63 }
  0xa9   : > { %1133 = vrot.lane.b32.xlu1 %v2441_v35, %s1967_s23  ;;  %v627_v38 = vrot.slane %v626_v54, 4  ;;  %v1499_v31 = vsel %vm1497_vm11, %v1466_v32, %v1215_v18  ;;  %v821_v18 = vrot.slane %v2529_v58, 5  ;;  %v642_v5 = vsel %vm2116_vm5, %v637_v33, %v641_v11  ;;  %v2631_v33 = vld [vmem:[%s2025_s22 + $0xb8] sm:$0xf] }
  0xaa   : > { %v2590_v57 = vcombine.low %v2502_v2, %v2509_v9  ;;  %v1793_v58 = vrot.slane %v2502_v2, 9  ;;  %v450_v28 = vsel %vm2116_vm5, %v445_v41, %v449_v37  ;;  %v764_v54 = vrot.slane %v762_v36, 4 }
  0xab   : > { %1117 = vrot.lane.b32.xlu0 %v2454_v3, %s1967_s23  ;;  %v1266_v42 = vpop.permute.xlu1 %1265  ;;  %v632_v22 = vsel %vm2116_vm5, %v627_v38, %v2531_v43  ;;  %v440_v43 = vsel %vm2116_vm5, %v435_v39, %v2542_v46  ;;  %v819_v2 = vsel %vm2053_vm2, %v1801_v15, %v818_v26  ;;  %v822_v9 = vsel %vm2053_vm2, %v820_v20, %v821_v18  ;;  %v2628_v38 = vld [vmem:[%s2025_s22 + $0xb4] sm:$0xf]  ;;  %v2654_v15 = vld [vmem:[%s2025_s22 + $0xbc] sm:$0x1] }
  0xac   : > { %v1548_v40 = vsel %vm1530_vm12, %v1515_v24, %v1266_v42  ;;  %v2601_v42 = vcombine.low %v632_v22, %v642_v5  ;;  %v2609_v48 = vcombine.low %v440_v43, %v450_v28  ;;  %v763_v62 = vsel %vm2053_vm2, %v1793_v58, %v762_v36  ;;  %v2634_v26 = vld [vmem:[%s2025_s22 + $0x54] sm:$0xf]  ;;  %v2661_v58 = vld [vmem:[%s2025_s22 + $0x5c] sm:$0x1] }
  0xad   : > { %v1250_v30 = vpop.permute.xlu0 %1249  ;;  %1168 = vrot.lane.b32.xlu1 %v2465_v19, %s1971_s27  ;;  %v766_v7 = vsel %vm2053_vm2, %v764_v54, %v765_v23  ;;  %v2617_v29 = vcombine.low %v819_v2, %v822_v9  ;;  %v647_v39 = vshll.u32 %v2628_v38, 16  ;;  %v657_v37 = vshrl.u32 %v2631_v33, 16 }
  0xae   : > { %v1532_v1 = vsel %vm1530_vm12, %v1499_v31, %v1250_v30  ;;  %v2621_v30 = vcombine.low %v763_v62, %v766_v7  ;;  %v653_v31 = vshll.u32 %v2631_v33, 16  ;;  %v452_v41 = vshrl.u32 %v2634_v26, 16 }
  0xaf   : > { %1152 = vrot.lane.b32.xlu0 %v2473_v45, %s1971_s27  ;;  %v1301_v52 = vpop.permute.xlu1 %1300  ;;  %v455_v36 = vshll.u32 %v2634_v26, 16  ;;  %v663_v23 = vshll.u32 %v2654_v15, 16 }
  0xb0   : > { %v1581_v6 = vsel %vm1563_vm13, %v1548_v40, %v1301_v52  ;;  %v2639_v40 = vld [vmem:[%s2025_s22 + $0x58] sm:$0xf]  ;;  %v644_v52 = vshrl.u32 %v2628_v38, 16  ;;  %v2656_v22 = vrot.slane %v653_v31, 5  ;;  %v454_v20 = vrot.slane %v452_v41, 4 }
  0xb1   : > { %v1285_v47 = vpop.permute.xlu0 %1284  ;;  %1203 = vrot.lane.b32.xlu1 %v2481_v8, %s1968_s24  ;;  %1881 = vmatprep.subr.msk.bf16.mxu0 %vm1597_vm14, %v1581_v6 }
  0xb2   : > { %v1565_v21 = vsel %vm1563_vm13, %v1532_v1, %v1285_v47  ;;  %v461_v1 = vshll.u32 %v2639_v40, 16  ;;  %v646_v18 = vrot.slane %v644_v52, 4 }
  0xb3   : > { %1187 = vrot.lane.b32.xlu0 %v2485_v51, %s1968_s24  ;;  %v1601_v63 = vsel %vm1597_vm14, %v1565_v21, 0  ;;  %v1013_v0 = vpop.permute.xlu1 %1012  ;;  %v649_v21 = vrot.slane %v647_v39, 5  ;;  %v471_v39 = vshll.u32 %v2661_v58, 16 }
  0xb4   : > { %1864 = vmatpush3.bf16.xpose.msra.mxu0 %v1601_v63  ;;  %v457_v63 = vrot.slane %v455_v36, 5  ;;  %v2663_v43 = vrot.slane %v461_v1, 5 }
  0xb5   : > { %v997_v17 = vpop.permute.xlu0 %996  ;;  %1238 = vrot.lane.b32.xlu1 %v2575_v44, %s1972_s28 }
  0xb6   : > { %v1322_v62 = vsel %vm1316_vm6, %v2047_v10, %v997_v17  ;;  %v458_v52 = vor.u32 %v457_v63, %v454_v20  ;;  %v665_v17 = vrot.slane %v663_v23, 5  ;;  %v1802_v23 = vrot.slane %v2628_v38, 9 }
  0xb7   : > { %1222 = vrot.lane.b32.xlu0 %v2590_v57, %s1972_s28  ;;  %v1093_v46 = vpop.permute.xlu1 %1092 }
  0xb9   : > { %v1077_v56 = vpop.permute.xlu0 %1076  ;;  %1273 = vrot.lane.b32.xlu1 %v2601_v42, %s1973_s29 }
  0xbb   : > { %1257 = vrot.lane.b32.xlu0 %v2609_v48, %s1973_s29  ;;  %v1128_v27 = vpop.permute.xlu1 %1127 }
  0xbd   : > { %v1112_v11 = vpop.permute.xlu0 %1111  ;;  %1308 = vrot.lane.b32.xlu1 %v2617_v29, %s1974_s30 }
  0xbf   : > { %1292 = vrot.lane.b32.xlu0 %v2621_v30, %s1974_s30  ;;  %v1163_v24 = vpop.permute.xlu1 %1162 }
  0xc1   : > { %v1147_v32 = vpop.permute.xlu0 %1146  ;;  %1020 = vrot.lane.b32.xlu1 %v2465_v19, %s1970_s26  ;;  %v465_v19 = vshrl.u32 %v2639_v40, 16 }
  0xc3   : > { %1004 = vrot.lane.b32.xlu0 %v2473_v45, %s1970_s26  ;;  %v1198_v6 = vpop.permute.xlu1 %1197  ;;  %v659_v45 = vrot.slane %v657_v37, 4  ;;  %v467_v28 = vrot.slane %v465_v19, 4  ;;  %v1369_v37 = vsel %vm1365_vm7, %v1322_v62, %v1077_v56 }
  0xc4   : > { %v1402_v41 = vsel %vm1398_vm8, %v1369_v37, %v1112_v11 }
  0xc5   : > { %v1182_v47 = vpop.permute.xlu0 %1181  ;;  %1100 = vrot.lane.b32.xlu1 %v2481_v8, %s1969_s25  ;;  %v1346_v8 = vsel %vm1316_vm6, %v2037_v4, %v1013_v0  ;;  %v660_v9 = vor.u32 %v659_v45, %v2656_v22  ;;  %v1435_v19 = vsel %vm1431_vm9, %v1402_v41, %v1147_v32  ;;  %v473_v45 = vrot.slane %v471_v39, 5 }
  0xc6   : > { %v1385_v2 = vsel %vm1365_vm7, %v1346_v8, %v1093_v46  ;;  %v468_v46 = vor.u32 %v467_v28, %v2663_v43  ;;  %v769_v32 = vrot.slane %v2639_v40, 5  ;;  %v772_v39 = vrot.slane %v2661_v58, 5 }
  0xc7   : > { %1084 = vrot.lane.b32.xlu0 %v2485_v51, %s1969_s25  ;;  %v1233_v5 = vpop.permute.xlu1 %1232  ;;  %v650_v51 = vor.u32 %v649_v21, %v646_v18  ;;  %v1418_v7 = vsel %vm1398_vm8, %v1385_v2, %v1128_v27  ;;  %v825_v27 = vrot.slane %v2631_v33, 5  ;;  %v661_v18 = vrot.slane %v660_v9, 4 }
  0xc8   : > { %v1451_v31 = vsel %vm1431_vm9, %v1418_v7, %v1163_v24  ;;  %v1468_v24 = vsel %vm1464_vm10, %v1435_v19, %v1182_v47  ;;  %v469_v28 = vrot.slane %v468_v46, 4  ;;  %v2701_v47 = vcombine.low %v2628_v38, %v2631_v33 }
  0xc9   : > { %v1217_v54 = vpop.permute.xlu0 %1216  ;;  %1135 = vrot.lane.b32.xlu1 %v2575_v44, %s1967_s23  ;;  %v1484_v36 = vsel %vm1464_vm10, %v1451_v31, %v1198_v6  ;;  %v651_v56 = vrot.slane %v650_v51, 4  ;;  %v459_v6 = vrot.slane %v458_v52, 4  ;;  %v666_v9 = vsel %vm2116_vm5, %v661_v18, %v665_v17  ;;  %v2757_v18 = vld [vmem:[%s2025_s22 + $0xc4] sm:$0xf] }
  0xca   : > { %v1517_v1 = vsel %vm1497_vm11, %v1484_v36, %v1233_v5  ;;  %v1501_v20 = vsel %vm1497_vm11, %v1468_v24, %v1217_v54  ;;  %v828_v54 = vrot.slane %v2654_v15, 5  ;;  %v827_v62 = vrot.slane %v825_v27, 4 }
  0xcb   : > { %1119 = vrot.lane.b32.xlu0 %v2590_v57, %s1967_s23  ;;  %v1268_v0 = vpop.permute.xlu1 %1267  ;;  %v656_v51 = vsel %vm2116_vm5, %v651_v56, %v2656_v22  ;;  %v2716_v38 = vcombine.low %v2634_v26, %v2639_v40  ;;  %v1794_v15 = vrot.slane %v2634_v26, 9  ;;  %v464_v22 = vsel %vm2116_vm5, %v459_v6, %v2663_v43  ;;  %v2754_v56 = vld [vmem:[%s2025_s22 + $0xc0] sm:$0xf] }
  0xcc   : > { %v1550_v21 = vsel %vm1530_vm12, %v1517_v1, %v1268_v0  ;;  %v474_v0 = vsel %vm2116_vm5, %v469_v28, %v473_v45  ;;  %v771_v52 = vrot.slane %v769_v32, 4  ;;  %v2727_v31 = vcombine.low %v656_v51, %v666_v9  ;;  %v276_v28 = vld [vmem:[%s2025_s22 + $0xc8] sm:$0x1] }
  0xcd   : > { %v1252_v10 = vpop.permute.xlu0 %1251  ;;  %1170 = vrot.lane.b32.xlu1 %v2601_v42, %s1971_s27  ;;  %v826_v26 = vsel %vm2053_vm2, %v1802_v23, %v825_v27  ;;  %v829_v40 = vsel %vm2053_vm2, %v827_v62, %v828_v54  ;;  %v2735_v46 = vcombine.low %v464_v22, %v474_v0  ;;  %v770_v58 = vsel %vm2053_vm2, %v1794_v15, %v769_v32 }
  0xce   : > { %v1534_v5 = vsel %vm1530_vm12, %v1501_v20, %v1252_v10  ;;  %v773_v41 = vsel %vm2053_vm2, %v771_v52, %v772_v39  ;;  %v2743_v10 = vcombine.low %v826_v26, %v829_v40  ;;  %v844_v6 = vshrl.u32 %v2757_v18, 16 }
  0xcf   : > { %1154 = vrot.lane.b32.xlu0 %v2609_v48, %s1971_s27  ;;  %v1303_v11 = vpop.permute.xlu1 %1302  ;;  %v2747_v27 = vcombine.low %v770_v58, %v773_v41  ;;  %v840_v45 = vshll.u32 %v2757_v18, 16 }
  0xd0   : > { %v1583_v63 = vsel %vm1563_vm13, %v1550_v21, %v1303_v11  ;;  %v831_v21 = vshrl.u32 %v2754_v56, 16  ;;  %v834_v11 = vshll.u32 %v2754_v56, 16 }
  0xd1   : > { %v1287_v8 = vpop.permute.xlu0 %1286  ;;  %1205 = vrot.lane.b32.xlu1 %v2617_v29, %s1968_s24  ;;  %1882 = vmatprep.subr.msk.bf16.mxu0 %vm1597_vm14, %v1583_v63 }
  0xd2   : > { %v1567_v2 = vsel %vm1563_vm13, %v1534_v5, %v1287_v8  ;;  %v833_v32 = vrot.slane %v831_v21, 4  ;;  %v836_v5 = vrot.slane %v834_v11, 5  ;;  %v846_v8 = vrot.slane %v844_v6, 4 }
  0xd3   : > { %1189 = vrot.lane.b32.xlu0 %v2621_v30, %s1968_s24  ;;  %v1603_v33 = vsel %vm1597_vm14, %v1567_v2, 0  ;;  %v1015_v7 = vpop.permute.xlu1 %1014  ;;  %v1803_v21 = vrot.slane %v2754_v56, 9  ;;  %v862_v11 = vrot.slane %v276_v28, 5 }
  0xd4   : > { %1866 = vmatpush3.bf16.xpose.msra.mxu0 %v1603_v33  ;;  %v1349_v54 = vsel %vm1316_vm6, %v2180_v60, %v1015_v7 }
  0xd5   : > { %v999_v37 = vpop.permute.xlu0 %998  ;;  %1240 = vrot.lane.b32.xlu1 %v2701_v47, %s1972_s28 }
  0xd6   : > { %v1325_v62 = vsel %vm1316_vm6, %v2190_v14, %v999_v37  ;;  %v859_v14 = vrot.slane %v2757_v18, 5 }
  0xd7   : > { %1224 = vrot.lane.b32.xlu0 %v2716_v38, %s1972_s28  ;;  %v1095_v43 = vpop.permute.xlu1 %1094 }
  0xd8   : > { %v1387_v51 = vsel %vm1365_vm7, %v1349_v54, %v1095_v43 }
  0xd9   : > { %v1079_v36 = vpop.permute.xlu0 %1078  ;;  %1275 = vrot.lane.b32.xlu1 %v2727_v31, %s1973_s29 }
  0xda   : > { %v1371_v60 = vsel %vm1365_vm7, %v1325_v62, %v1079_v36 }
  0xdb   : > { %1259 = vrot.lane.b32.xlu0 %v2735_v46, %s1973_s29  ;;  %v1130_v17 = vpop.permute.xlu1 %1129 }
  0xdc   : > { %v1420_v33 = vsel %vm1398_vm8, %v1387_v51, %v1130_v17  ;;  %v2824_v51 = vld [vmem:[%s2025_s22 + $0xcc] sm:$0xf] }
  0xdd   : > { %v1114_v19 = vpop.permute.xlu0 %1113  ;;  %1310 = vrot.lane.b32.xlu1 %v2743_v10, %s1974_s30  ;;  %v865_v62 = vshrl.u32 %v2824_v51, 16 }
  0xde   : > { %v1404_v15 = vsel %vm1398_vm8, %v1371_v60, %v1114_v19 }
  0xdf   : > { %1294 = vrot.lane.b32.xlu0 %v2747_v27, %s1974_s30  ;;  %v1165_v1 = vpop.permute.xlu1 %1164 }
  0xe0   : > { %v1453_v7 = vsel %vm1431_vm9, %v1420_v33, %v1165_v1  ;;  %v868_v33 = vshll.u32 %v2824_v51, 16 }
  0xe1   : > { %v1149_v24 = vpop.permute.xlu0 %1148  ;;  %1022 = vrot.lane.b32.xlu1 %v2601_v42, %s1970_s26  ;;  %v842_v42 = vrot.slane %v840_v45, 5 }
  0xe2   : > { %v1437_v39 = vsel %vm1431_vm9, %v1404_v15, %v1149_v24  ;;  %v1853_v24 = vcombine.low %v2754_v56, %v2757_v18 }
  0xe3   : > { %1006 = vrot.lane.b32.xlu0 %v2609_v48, %s1970_s26  ;;  %v1200_v20 = vpop.permute.xlu1 %1199  ;;  %v850_v48 = vshll.u32 %v276_v28, 16  ;;  %v847_v9 = vor.u32 %v846_v8, %v842_v42  ;;  %v860_v28 = vsel %vm2053_vm2, %v1803_v21, %v859_v14 }
  0xe4   : > { %v1486_v22 = vsel %vm1464_vm10, %v1453_v7, %v1200_v20 }
  0xe5   : > { %v1184_v63 = vpop.permute.xlu0 %1183  ;;  %1102 = vrot.lane.b32.xlu1 %v2617_v29, %s1969_s25  ;;  %v837_v29 = vor.u32 %v836_v5, %v833_v32  ;;  %v852_v52 = vrot.slane %v850_v48, 5  ;;  %v848_v40 = vrot.slane %v847_v9, 4 }
  0xe6   : > { %v1470_v43 = vsel %vm1464_vm10, %v1437_v39, %v1184_v63  ;;  %v861_v63 = vrot.slane %v859_v14, 4 }
  0xe7   : > { %1086 = vrot.lane.b32.xlu0 %v2621_v30, %s1969_s25  ;;  %v1235_v23 = vpop.permute.xlu1 %1234  ;;  %v838_v26 = vrot.slane %v837_v29, 4  ;;  %v853_v20 = vsel %vm2116_vm5, %v848_v40, %v852_v52  ;;  %v2827_v29 = vld [vmem:[%s2025_s22 + $0xd0] sm:$0xf] }
  0xe8   : > { %v1519_v37 = vsel %vm1497_vm11, %v1486_v22, %v1235_v23  ;;  %v878_v60 = vshrl.u32 %v2827_v29, 16  ;;  %v874_v7 = vshll.u32 %v2827_v29, 16  ;;  %v867_v22 = vrot.slane %v865_v62, 4  ;;  %v2884_v62 = vld [vmem:[%s3003_s1] sm:$0xf] }
  0xe9   : > { %v1219_v2 = vpop.permute.xlu0 %1218  ;;  %1137 = vrot.lane.b32.xlu1 %v2701_v47, %s1967_s23  ;;  %v843_v45 = vsel %vm2116_vm5, %v838_v26, %v842_v42  ;;  %v863_v42 = vsel %vm2053_vm2, %v861_v63, %v862_v11  ;;  %1879 = vmatprep.mubr.msk.bf16.mxu0 %vm1597_vm14, %v2884_v62 }
  0xea   : > { %v1503_v36 = vsel %vm1497_vm11, %v1470_v43, %v1219_v2  ;;  %v1854_v18 = vcombine.low %v843_v45, %v853_v20  ;;  %v1855_v54 = vcombine.low %v860_v28, %v863_v42  ;;  %v876_v14 = vrot.slane %v874_v7, 5 }
  0xeb   : > { %1121 = vrot.lane.b32.xlu0 %v2716_v38, %s1967_s23  ;;  %v1270_v30 = vpop.permute.xlu1 %1269  ;;  %v880_v39 = vrot.slane %v878_v60, 4 }
  0xec   : > { %v1552_v58 = vsel %vm1530_vm12, %v1519_v37, %v1270_v30  ;;  %v279_v37 = vld [vmem:[%s2025_s22 + $0xd4] sm:$0x1] }
  0xed   : > { %v1254_v0 = vpop.permute.xlu0 %1253  ;;  %1172 = vrot.lane.b32.xlu1 %v2727_v31, %s1971_s27 }
  0xee   : > { %v1536_v19 = vsel %vm1530_vm12, %v1503_v36, %v1254_v0  ;;  %v870_v0 = vrot.slane %v868_v33, 5 }
  0xef   : > { %1156 = vrot.lane.b32.xlu0 %v2735_v46, %s1971_s27  ;;  %v1305_v41 = vpop.permute.xlu1 %1304 }
  0xf0   : > { %v1585_v17 = vsel %vm1563_vm13, %v1552_v58, %v1305_v41  ;;  %v871_v26 = vor.u32 %v870_v0, %v867_v22  ;;  %v884_v58 = vshll.u32 %v279_v37, 16  ;;  %v1975_v22 = vmov 0  }
  0xf1   : > { %v1289_v1 = vpop.permute.xlu0 %1288  ;;  %1207 = vrot.lane.b32.xlu1 %v2743_v10, %s1968_s24  ;;  %1883 = vmatprep.subr.msk.bf16.mxu0 %vm1597_vm14, %v1585_v17 }
  0xf2   : > { %v1569_v6 = vsel %vm1563_vm13, %v1536_v19, %v1289_v1  ;;  %v872_v19 = vrot.slane %v871_v26, 4  ;;  %1923 = vset.pattern.permute.xlu0 %v1975_v22  ;;  %1924 = vset.pattern.permute.xlu1 %v1975_v22 }
  0xf3   : > { %1191 = vrot.lane.b32.xlu0 %v2747_v27, %s1968_s24  ;;  %v1605_v32 = vsel %vm1597_vm14, %v1569_v6, 0  ;;  %v1017_v5 = vpop.permute.xlu1 %1016 }
  0xf4   : > { %1868 = vmatpush3.bf16.xpose.msra.mxu0 %v1605_v32  ;;  %v1352_v40 = vsel %vm1316_vm6, %v2274_v49, %v1017_v5 }
  0xf5   : > { %v1001_v56 = vpop.permute.xlu0 %1000  ;;  %1242 = vrot.lane.b32.xlu1 %v1853_v24, %s1972_s28 }
  0xf7   : > { %1226 = vrot.lane.b32.xlu0 %v2491_v55, %s1972_s28  ;;  %v1097_v8 = vpop.permute.xlu1 %1096 }
  0xf8   : > { %v1389_v41 = vsel %vm1365_vm7, %v1352_v40, %v1097_v8  ;;  %v877_v8 = vsel %vm2116_vm5, %v872_v19, %v876_v14 }
  0xf9   : > { %v1081_v23 = vpop.permute.xlu0 %1080  ;;  %1277 = vrot.lane.b32.xlu1 %v1854_v18, %s1973_s29 }
  0xfb   : > { %1261 = vrot.lane.b32.xlu0 %v2160_v50, %s1973_s29  ;;  %v1132_v2 = vpop.permute.xlu1 %1131 }
  0xfc   : > { %v1422_v36 = vsel %vm1398_vm8, %v1389_v41, %v1132_v2  ;;  %v1804_v2 = vrot.slane %v2824_v51, 9 }
  0xfd   : > { %v1116_v48 = vpop.permute.xlu0 %1115  ;;  %1312 = vrot.lane.b32.xlu1 %v1855_v54, %s1974_s30 }
  0xff   : > { %1296 = vrot.lane.b32.xlu0 %v2108_v53, %s1974_s30  ;;  %v1167_v9 = vpop.permute.xlu1 %1166 }
 0x100   : > { %v1455_v49 = vsel %vm1431_vm9, %v1422_v36, %v1167_v9  ;;  %v896_v9 = vrot.slane %v279_v37, 5 }
 0x101   : > { %v1151_v30 = vpop.permute.xlu0 %1150  ;;  %1024 = vrot.lane.b32.xlu1 %v2727_v31, %s1970_s26 }
 0x103   : > { %1008 = vrot.lane.b32.xlu0 %v2735_v46, %s1970_s26  ;;  %v1202_v15 = vpop.permute.xlu1 %1201  ;;  %v881_v46 = vor.u32 %v880_v39, %v876_v14 }
 0x105   : > { %v1186_v52 = vpop.permute.xlu0 %1185  ;;  %1104 = vrot.lane.b32.xlu1 %v2743_v10, %s1969_s25  ;;  %v1328_v10 = vsel %vm1316_vm6, %v2284_v12, %v1001_v56  ;;  %v882_v11 = vrot.slane %v881_v46, 4  ;;  %v886_v12 = vrot.slane %v884_v58, 5 }
 0x106   : > { %v1373_v17 = vsel %vm1365_vm7, %v1328_v10, %v1081_v23 }
 0x107   : > { %1088 = vrot.lane.b32.xlu0 %v2747_v27, %s1969_s25  ;;  %v1237_v31 = vpop.permute.xlu1 %1236  ;;  %v1406_v1 = vsel %vm1398_vm8, %v1373_v17, %v1116_v48 }
 0x108   : > { %v1439_v6 = vsel %vm1431_vm9, %v1406_v1, %v1151_v30 }
 0x109   : > { %v1221_v43 = vpop.permute.xlu0 %1220  ;;  %1139 = vrot.lane.b32.xlu1 %v1853_v24, %s1967_s23  ;;  %v1488_v24 = vsel %vm1464_vm10, %v1455_v49, %v1202_v15  ;;  %v1472_v20 = vsel %vm1464_vm10, %v1439_v6, %v1186_v52  ;;  %v1674_v52 = vld [vmem:[%s3004_s2] sm:$0xff] }
 0x10a   : > { %v1521_v45 = vsel %vm1497_vm11, %v1488_v24, %v1237_v31  ;;  %v1505_v5 = vsel %vm1497_vm11, %v1472_v20, %v1221_v43 }
 0x10b   : > { %1123 = vrot.lane.b32.xlu0 %v2491_v55, %s1967_s23  ;;  %v1272_v27 = vpop.permute.xlu1 %1271  ;;  %v893_v55 = vrot.slane %v2827_v29, 5 }
 0x10c   : > { %v1554_v63 = vsel %vm1530_vm12, %v1521_v45, %v1272_v27 }
 0x10d   : > { %v1256_v21 = vpop.permute.xlu0 %1255  ;;  %1174 = vrot.lane.b32.xlu1 %v1854_v18, %s1971_s27  ;;  %v1856_v18 = vcombine.low %v2824_v51, %v2827_v29  ;;  %v895_v48 = vrot.slane %v893_v55, 4  ;;  %v894_v51 = vsel %vm2053_vm2, %v1804_v2, %v893_v55 }
 0x10e   : > { %v1538_v28 = vsel %vm1530_vm12, %v1505_v5, %v1256_v21 }
 0x10f   : > { %1158 = vrot.lane.b32.xlu0 %v2160_v50, %s1971_s27  ;;  %v1307_v32 = vpop.permute.xlu1 %1306  ;;  %v887_v50 = vsel %vm2116_vm5, %v882_v11, %v886_v12 }
 0x110   : > { %v1587_v56 = vsel %vm1563_vm13, %v1554_v63, %v1307_v32  ;;  %v1857_v33 = vcombine.low %v877_v8, %v887_v50 }
 0x111   : > { %v1291_v42 = vpop.permute.xlu0 %1290  ;;  %1209 = vrot.lane.b32.xlu1 %v1855_v54, %s1968_s24  ;;  %1884 = vmatprep.subr.msk.bf16.mxu0 %vm1597_vm14, %v1587_v56 }
 0x112   : > { %v1571_v23 = vsel %vm1563_vm13, %v1538_v28, %v1291_v42 }
 0x113   : > { %1193 = vrot.lane.b32.xlu0 %v2108_v53, %s1968_s24  ;;  %v1607_v29 = vsel %vm1597_vm14, %v1571_v23, 0  ;;  %v1019_v54 = vpop.permute.xlu1 %1018  ;;  %v897_v53 = vsel %vm2053_vm2, %v895_v48, %v896_v9 }
 0x114   : > { %1870 = vmatpush3.bf16.xpose.msra.mxu0 %v1607_v29  ;;  %v1858_v7 = vcombine.low %v894_v51, %v897_v53  ;;  %v1355_v31 = vsel %vm1316_vm6, %v2349_v59, %v1019_v54 }
 0x115   : > { %v1003_v61 = vpop.permute.xlu0 %1002  ;;  %1244 = vrot.lane.b32.xlu1 %v1856_v18, %s1972_s28 }
 0x117   : > { %1228 = vrot.lane.b32.xlu0 %v2037_v4, %s1972_s28  ;;  %v1099_v30 = vpop.permute.xlu1 %1098 }
 0x118   : > { %v1391_v40 = vsel %vm1365_vm7, %v1355_v31, %v1099_v30 }
 0x119   : > { %v1083_v60 = vpop.permute.xlu0 %1082  ;;  %1279 = vrot.lane.b32.xlu1 %v1857_v33, %s1973_s29 }
 0x11b   : > { %1263 = vrot.lane.b32.xlu0 %v2192_v16, %s1973_s29  ;;  %v1134_v15 = vpop.permute.xlu1 %1133 }
 0x11c   : > { %v1424_v43 = vsel %vm1398_vm8, %v1391_v40, %v1134_v15 }
 0x11d   : > { %v1118_v0 = vpop.permute.xlu0 %1117  ;;  %1314 = vrot.lane.b32.xlu1 %v1858_v7, %s1974_s30 }
 0x11f   : > { %1298 = vrot.lane.b32.xlu0 %v2135_v34, %s1974_s30  ;;  %v1169_v4 = vpop.permute.xlu1 %1168  ;;  %v1331_v34 = vsel %vm1316_vm6, %v2358_v25, %v1003_v61 }
 0x120   : > { %v1375_v58 = vsel %vm1365_vm7, %v1331_v34, %v1083_v60  ;;  %v1457_v41 = vsel %vm1431_vm9, %v1424_v43, %v1169_v4 }
 0x121   : > { %v1153_v16 = vpop.permute.xlu0 %1152  ;;  %1685 = vperm.xlu1 %1924, %v1682_v13   ;;  %v1408_v10 = vsel %vm1398_vm8, %v1375_v58, %v1118_v0 }
 0x122   : > { %v1441_v59 = vsel %vm1431_vm9, %v1408_v10, %v1153_v16 }
 0x123   : > { %v1204_v14 = vpop.permute.xlu1 %1203  ;;  %1677 = vperm.xlu0 %1923, %v1674_v52  }
 0x124   : > { %v1490_v36 = vsel %vm1464_vm10, %v1457_v41, %v1204_v14 }
 0x125   : > { %v1188_v39 = vpop.permute.xlu0 %1187 }
 0x126   : > { %v1474_v49 = vsel %vm1464_vm10, %v1441_v59, %v1188_v39 }
 0x127   : > { %v1239_v37 = vpop.permute.xlu1 %1238 }
 0x128   : > { %v1523_v17 = vsel %vm1497_vm11, %v1490_v36, %v1239_v37 }
 0x129   : > { %v1223_v26 = vpop.permute.xlu0 %1222 }
 0x12a   : > { %v1507_v1 = vsel %vm1497_vm11, %v1474_v49, %v1223_v26 }
 0x12b   : > { %v1274_v46 = vpop.permute.xlu1 %1273 }
 0x12c   : > { %v1556_v25 = vsel %vm1530_vm12, %v1523_v17, %v1274_v46 }
 0x12d   : > { %v1258_v27 = vpop.permute.xlu0 %1257 }
 0x12e   : > { %v1540_v21 = vsel %vm1530_vm12, %v1507_v1, %v1258_v27 }
 0x12f   : > { %v1309_v19 = vpop.permute.xlu1 %1308 }
 0x130   : > { %v1589_v24 = vsel %vm1563_vm13, %v1556_v25, %v1309_v19 }
 0x131   : > { %v1293_v11 = vpop.permute.xlu0 %1292  ;;  %1885 = vmatprep.subr.msk.bf16.mxu0 %vm1597_vm14, %v1589_v24 }
 0x132   : > { %v1573_v12 = vsel %vm1563_vm13, %v1540_v21, %v1293_v11 }
 0x133   : > { %v1609_v6 = vsel %vm1597_vm14, %v1573_v12, 0  ;;  %v1021_v45 = vpop.permute.xlu1 %1020 }
 0x134   : > { %1872 = vmatpush3.bf16.xpose.msra.mxu0 %v1609_v6  ;;  %v1358_v50 = vsel %vm1316_vm6, %v2441_v35, %v1021_v45 }
 0x135   : > { %v1005_v55 = vpop.permute.xlu0 %1004 }
 0x136   : > { %v1334_v48 = vsel %vm1316_vm6, %v2454_v3, %v1005_v55 }
 0x137   : > { %v1101_v20 = vpop.permute.xlu1 %1100 }
 0x138   : > { %v1393_v2 = vsel %vm1365_vm7, %v1358_v50, %v1101_v20 }
 0x139   : > { %v1085_v63 = vpop.permute.xlu0 %1084 }
 0x13a   : > { %v1377_v54 = vsel %vm1365_vm7, %v1334_v48, %v1085_v63 }
 0x13b   : > { %v1136_v32 = vpop.permute.xlu1 %1135 }
 0x13c   : > { %v1426_v9 = vsel %vm1398_vm8, %v1393_v2, %v1136_v32 }
 0x13d   : > { %v1120_v5 = vpop.permute.xlu0 %1119 }
 0x13e   : > { %v1410_v33 = vsel %vm1398_vm8, %v1377_v54, %v1120_v5 }
 0x13f   : > { %v1171_v56 = vpop.permute.xlu1 %1170 }
 0x140   : > { %v1459_v61 = vsel %vm1431_vm9, %v1426_v9, %v1171_v56 }
 0x141   : > { %v1155_v18 = vpop.permute.xlu0 %1154 }
 0x142   : > { %v1443_v35 = vsel %vm1431_vm9, %v1410_v33, %v1155_v18 }
 0x143   : > { %v1206_v28 = vpop.permute.xlu1 %1205 }
 0x144   : > { %v1492_v51 = vsel %vm1464_vm10, %v1459_v61, %v1206_v28 }
 0x145   : > { %v1190_v42 = vpop.permute.xlu0 %1189 }
 0x146   : > { %v1476_v60 = vsel %vm1464_vm10, %v1443_v35, %v1190_v42 }
 0x147   : > { %v1241_v8 = vpop.permute.xlu1 %1240 }
 0x148   : > { %v1525_v30 = vsel %vm1497_vm11, %v1492_v51, %v1241_v8 }
 0x149   : > { %v1225_v23 = vpop.permute.xlu0 %1224 }
 0x14a   : > { %v1509_v15 = vsel %vm1497_vm11, %v1476_v60, %v1225_v23 }
 0x14b   : > { %v1276_v29 = vpop.permute.xlu1 %1275 }
 0x14c   : > { %v1558_v3 = vsel %vm1530_vm12, %v1525_v30, %v1276_v29 }
 0x14d   : > { %v1260_v53 = vpop.permute.xlu0 %1259 }
 0x14e   : > { %v1542_v0 = vsel %vm1530_vm12, %v1509_v15, %v1260_v53 }
 0x14f   : > { %v1311_v7 = vpop.permute.xlu1 %1310 }
 0x150   : > { %v1591_v22 = vsel %vm1563_vm13, %v1558_v3, %v1311_v7 }
 0x151   : > { %v1295_v13 = vpop.permute.xlu0 %1294  ;;  %1886 = vmatprep.subr.msk.bf16.mxu0 %vm1597_vm14, %v1591_v22 }
 0x152   : > { %v1575_v4 = vsel %vm1563_vm13, %v1542_v0, %v1295_v13 }
 0x153   : > { %v1611_v52 = vsel %vm1597_vm14, %v1575_v4, 0  ;;  %v1023_v16 = vpop.permute.xlu1 %1022 }
 0x154   : > { %1874 = vmatpush3.bf16.xpose.msra.mxu0 %v1611_v52  ;;  %v1361_v41 = vsel %vm1316_vm6, %v2575_v44, %v1023_v16 }
 0x155   : > { %v1007_v14 = vpop.permute.xlu0 %1006 }
 0x156   : > { %v1337_v27 = vsel %vm1316_vm6, %v2590_v57, %v1007_v14 }
 0x157   : > { %v1103_v39 = vpop.permute.xlu1 %1102 }
 0x158   : > { %v1395_v36 = vsel %vm1365_vm7, %v1361_v41, %v1103_v39 }
 0x159   : > { %v1087_v37 = vpop.permute.xlu0 %1086 }
 0x15a   : > { %v1379_v49 = vsel %vm1365_vm7, %v1337_v27, %v1087_v37 }
 0x15b   : > { %v1138_v31 = vpop.permute.xlu1 %1137 }
 0x15c   : > { %v1428_v59 = vsel %vm1398_vm8, %v1395_v36, %v1138_v31 }
 0x15d   : > { %v1122_v26 = vpop.permute.xlu0 %1121 }
 0x15e   : > { %v1412_v19 = vsel %vm1398_vm8, %v1379_v49, %v1122_v26 }
 0x15f   : > { %v1173_v40 = vpop.permute.xlu1 %1172 }
 0x160   : > { %v1461_v25 = vsel %vm1431_vm9, %v1428_v59, %v1173_v40 }
 0x161   : > { %v1157_v34 = vpop.permute.xlu0 %1156 }
 0x162   : > { %v1445_v44 = vsel %vm1431_vm9, %v1412_v19, %v1157_v34 }
 0x163   : > { %v1208_v43 = vpop.permute.xlu1 %1207 }
 0x164   : > { %v1494_v1 = vsel %vm1464_vm10, %v1461_v25, %v1208_v43 }
 0x165   : > { %v1192_v46 = vpop.permute.xlu0 %1191 }
 0x166   : > { %v1478_v11 = vsel %vm1464_vm10, %v1445_v44, %v1192_v46 }
 0x167   : > { %v1243_v58 = vpop.permute.xlu1 %1242 }
 0x168   : > { %v1527_v21 = vsel %vm1497_vm11, %v1494_v1, %v1243_v58 }
 0x169   : > { %v1227_v10 = vpop.permute.xlu0 %1226 }
 0x16a   : > { %v1511_v6 = vsel %vm1497_vm11, %v1478_v11, %v1227_v10 }
 0x16b   : > { %v1278_v17 = vpop.permute.xlu1 %1277 }
 0x16c   : > { %v1560_v57 = vsel %vm1530_vm12, %v1527_v21, %v1278_v17 }
 0x16d   : > { %v1262_v24 = vpop.permute.xlu0 %1261 }
 0x16e   : > { %v1544_v55 = vsel %vm1530_vm12, %v1511_v6, %v1262_v24 }
 0x16f   : > { %v1313_v12 = vpop.permute.xlu1 %1312 }
 0x170   : > { %v1593_v45 = vsel %vm1563_vm13, %v1560_v57, %v1313_v12 }
 0x171   : > { %v1297_v20 = vpop.permute.xlu0 %1296  ;;  %1887 = vmatprep.subr.msk.bf16.mxu0 %vm1597_vm14, %v1593_v45 }
 0x172   : > { %v1577_v63 = vsel %vm1563_vm13, %v1544_v55, %v1297_v20 }
 0x173   : > { %v1613_v32 = vsel %vm1597_vm14, %v1577_v63, 0  ;;  %v1025_v5 = vpop.permute.xlu1 %1024 }
 0x174   : > { %1876 = vmatpush3.bf16.xpose.msra.mxu0 %v1613_v32  ;;  %v1364_v29 = vsel %vm1316_vm6, %v2701_v47, %v1025_v5 }
 0x175   : > { %v1009_v56 = vpop.permute.xlu0 %1008 }
 0x176   : > { %v1340_v33 = vsel %vm1316_vm6, %v2716_v38, %v1009_v56 }
 0x177   : > { %v1105_v18 = vpop.permute.xlu1 %1104 }
 0x178   : > { %v1397_v61 = vsel %vm1365_vm7, %v1364_v29, %v1105_v18 }
 0x179   : > { %v1089_v28 = vpop.permute.xlu0 %1088 }
 0x17a   : > { %v1381_v35 = vsel %vm1365_vm7, %v1340_v33, %v1089_v28 }
 0x17b   : > { %v1140_v42 = vpop.permute.xlu1 %1139 }
 0x17c   : > { %v1430_v51 = vsel %vm1398_vm8, %v1397_v61, %v1140_v42 }
 0x17d   : > { %v1124_v8 = vpop.permute.xlu0 %1123 }
 0x17e   : > { %v1414_v60 = vsel %vm1398_vm8, %v1381_v35, %v1124_v8 }
 0x17f   : > { %v1175_v50 = vpop.permute.xlu1 %1174 }
 0x180   : > { %v1463_v30 = vsel %vm1431_vm9, %v1430_v51, %v1175_v50 }
 0x181   : > { %v1159_v23 = vpop.permute.xlu0 %1158 }
 0x182   : > { %v1447_v47 = vsel %vm1431_vm9, %v1414_v60, %v1159_v23 }
 0x183   : > { %v1210_v2 = vpop.permute.xlu1 %1209 }
 0x184   : > { %v1496_v3 = vsel %vm1464_vm10, %v1463_v30, %v1210_v2 }
 0x185   : > { %v1194_v48 = vpop.permute.xlu0 %1193 }
 0x186   : > { %v1480_v22 = vsel %vm1464_vm10, %v1447_v47, %v1194_v48 }
 0x187   : > { %v1245_v9 = vpop.permute.xlu1 %1244 }
 0x188   : > { %v1529_v15 = vsel %vm1497_vm11, %v1496_v3, %v1245_v9 }
 0x189   : > { %v1229_v54 = vpop.permute.xlu0 %1228 }
 0x18a   : > { %v1513_v13 = vsel %vm1497_vm11, %v1480_v22, %v1229_v54 }
 0x18b   : > { %v1280_v53 = vpop.permute.xlu1 %1279 }
 0x18c   : > { %v1562_v38 = vsel %vm1530_vm12, %v1529_v15, %v1280_v53 }
 0x18d   : > { %v1264_v7 = vpop.permute.xlu0 %1263 }
 0x18e   : > { %v1546_v52 = vsel %vm1530_vm12, %v1513_v13, %v1264_v7 }
 0x18f   : > { %v1315_v0 = vpop.permute.xlu1 %1314 }
 0x190   : > { %v1595_v4 = vsel %vm1563_vm13, %v1562_v38, %v1315_v0 }
 0x191   : > { %v1299_v16 = vpop.permute.xlu0 %1298  ;;  %1888 = vmatprep.subr.msk.bf16.mxu0 %vm1597_vm14, %v1595_v4 }
 0x192   : > { %v1579_v14 = vsel %vm1563_vm13, %v1546_v52, %v1299_v16 }
 0x193   : > { %v1615_v39 = vsel %vm1597_vm14, %v1579_v14, 0 }
 0x194   : > { %1878 = vmatpush3.bf16.xpose.msra.mxu0 %v1615_v39 }
 0x19b   : > { %1880 = vmatmul.mubr.msk.bf16.vlgmr.msra.gmra.mrb[0].mxu0 %vm1597_vm14, %v2884_v62 }
 0x1a0   : > { %v1686_v26 = vpop.permute.xlu1 %1685 }
 0x1a2   : > { %v1678_v37 = vpop.permute.xlu0 %1677 }
 0x26e   : > { %v1667_v31 = vpop.f32.mrb[0].mxu0 }
 0x26f   : > { %v1680_v40 = vmul.f32 %v1678_v37, %v1667_v31  ;;  %v1669_v34 = vpop.f32.mrb[1].mxu0 }
 0x270   : > { %v1681_v43 = vmul.f32 %v1678_v37, %v1669_v34  ;;  %v1671_v46 = vpop.f32.mrb[2].mxu0 }
 0x271   : > { %v1688_v58 = vadd.f32 %v1686_v26, %v1680_v40  ;;  %v1672_v41 = vpop.f32.mrb[3].mxu0 }
 0x272   : > { %v1689_v10 = vadd.f32 %v1686_v26, %v1681_v43 }
 0x273   : > { %v1690_v36 = vmul.f32 0.1, %v1688_v58 }
 0x274   : > { %v1691_v27 = vmul.f32 0.1, %v1689_v10 }
 0x275   : > { %v1692_v59 = vmax.f32 %v1688_v58, %v1690_v36 }
 0x276   : > { %v1693_v17 = vmax.f32 %v1689_v10, %v1691_v27 }
 0x277   : > { %1694 = vst [vmem:[%s219_s14] sm:$0xff] %v1692_v59 }
 0x278   : > { %1695 = vst [vmem:[%s219_s14 + $0x8] sm:$0xff] %v1693_v17 }
 0x279 PF: > { %s14_s17 = sadd.s32 1, %s1965_s17   ;;  %s3011_s15 = smov %s1961_s16 }
 0x27a   : > { %p11_p5 = scmp.ge.s32.totalorder %s14_s17, 4   ;;  %s3012_s16 = smov %s3014_s18 }
 0x27c   :  { %13 = sbr.rel (!%p11_p5) target bundleno = 2 (0x2), region = 67 }

</bundles_post_ra>
